<compile_context>
chip_gen: v5e
topology: v5e:2x2
jax: 0.10.0
libtpu: 0.0.40
codegen_flags: <defaults>
</compile_context>

<pallas_src>
import jax
import jax.numpy as jnp
from jax import lax
from jax.experimental import pallas as pl
from jax.experimental.pallas import tpu as pltpu

_HP = lax.Precision.HIGHEST  # deliberate: f32 parity; MXU is not the bottleneck


def _mlp_kernel(x_ref, w1_ref, b1_ref, w2_ref, b2_ref,
                w3_ref, b3_ref, w4_ref, b4_ref, o_ref):
    x = x_ref[...]                                        # (D, TB), lane-dense on TB

    # Layer 1: (128, D) @ (D, TB) -> (128, TB); feature-major, no relayout.
    h = jnp.dot(w1_ref[...], x, preferred_element_type=jnp.float32, precision=_HP)
    h = jnp.maximum(h + b1_ref[...], 0.0)

    # Layer 2: (64, 128) @ (128, TB) -> (64, TB)
    h = jnp.dot(w2_ref[...], h, preferred_element_type=jnp.float32, precision=_HP)
    h = jnp.maximum(h + b2_ref[...], 0.0)

    # Layer 3: (32, 64) @ (64, TB) -> (32, TB)
    h = jnp.dot(w3_ref[...], h, preferred_element_type=jnp.float32, precision=_HP)
    h = jnp.maximum(h + b3_ref[...], 0.0)

    # Dropout(0.5) in eval mode == identity.
    # Layer 4 on the VPU/XLU instead of an N=1 MXU matmul:
    #   out[0, b] = sum_k w4[k, 0] * h[k, b] + b4
    o_ref[...] = jnp.sum(h * w4_ref[...], axis=0, keepdims=True) + b4_ref[...]


def price_model_forward(x, params):
    """x: [B, input_dim] float32. Returns [B, 1] float32."""
    (w1, b1), (w2, b2), (w3, b3), (w4, b4) = params
    B, D = x.shape
    H1, H2, H3 = 128, 64, 32

    # Batch tile: multiple of 128, cap 4096 (step-overhead vs VMEM tradeoff),
    # and >= 2 grid steps whenever B is big enough to split (v7x megacore).
    CAP = 4096
    half = -(-B // 2)                                   # cdiv(B, 2)
    TB = max(128, min(CAP, ((half + 127) // 128) * 128))
    num_tiles = pl.cdiv(B, TB)                          # partial last block masked by Pallas

    # Feature-major x: (D, B).  One small wrapper-side transpose; the kernel
    # then sees lane-dense (D, TB) blocks with zero in-kernel relayout.
    x_t = jnp.transpose(x)

    flops = 2 * B * (D * H1 + H1 * H2 + H2 * H3 + H3)
    param_bytes = 4 * (H1 * D + H1 + H2 * H1 + H2 + H3 * H2 + H3 + H3 + 1)
    bytes_accessed = 4 * B * (D + 1) + param_bytes

    const = lambda i: (0, 0)  # weights/biases: same block every step (VMEM-resident)

    out = pl.pallas_call(
        _mlp_kernel,
        out_shape=jax.ShapeDtypeStruct((1, B), jnp.float32),
        grid=(num_tiles,),
        in_specs=[
            pl.BlockSpec((D, TB), lambda i: (0, i)),   # x tile, feature-major (streamed)
            pl.BlockSpec((H1, D), const),              # w1 (128, D)
            pl.BlockSpec((H1, 1), const),              # b1 (128, 1)
            pl.BlockSpec((H2, H1), const),             # w2 (64, 128)
            pl.BlockSpec((H2, 1), const),              # b2 (64, 1)
            pl.BlockSpec((H3, H2), const),             # w3 (32, 64)
            pl.BlockSpec((H3, 1), const),              # b3 (32, 1)
            pl.BlockSpec((H3, 1), const),              # w4 (32, 1) column
            pl.BlockSpec((1, 1), const),               # b4 (1, 1)
        ],
        out_specs=pl.BlockSpec((1, TB), lambda i: (0, i)),  # lane-dense output slab
        compiler_params=pltpu.CompilerParams(
            dimension_semantics=("parallel",)),
        cost_estimate=pl.CostEstimate(flops=flops, transcendentals=0,
                                      bytes_accessed=bytes_accessed),
    )(x_t, w1, b1, w2, b2, w3, b3, w4, b4)

    return out[0, :].reshape(B, 1)


def init_params(key, input_dim):
    """Deterministic PyTorch-style (Kaiming-uniform-ish) init.

    Layout: layers 1-3 store weights as (out_features, in_features) (torch
    layout) and biases as (out_features, 1) columns, matching the kernel's
    feature-major activations.  Layer 4 stores its weight as a (32, 1) column
    (used via a VPU broadcast-multiply) and its bias as (1, 1).
    """
    sizes = [(input_dim, 128), (128, 64), (64, 32), (32, 1)]
    params = []
    for li, (fan_in, fan_out) in enumerate(sizes):
        key, kw, kb = jax.random.split(key, 3)
        bound = 1.0 / float(fan_in) ** 0.5
        if li < 3:
            w = jax.random.uniform(kw, (fan_out, fan_in), jnp.float32, -bound, bound)
            b = jax.random.uniform(kb, (fan_out, 1), jnp.float32, -bound, bound)
        else:
            w = jax.random.uniform(kw, (fan_in, fan_out), jnp.float32, -bound, bound)  # (32, 1)
            b = jax.random.uniform(kb, (1, fan_out), jnp.float32, -bound, bound)       # (1, 1)
        params.append((w, b))
    return params


def reference_forward(x, params):
    (w1, b1), (w2, b2), (w3, b3), (w4, b4) = params
    hp = lax.Precision.HIGHEST
    h = jnp.maximum(jnp.dot(x, w1.T, precision=hp) + b1.T, 0.0)
    h = jnp.maximum(jnp.dot(h, w2.T, precision=hp) + b2.T, 0.0)
    h = jnp.maximum(jnp.dot(h, w3.T, precision=hp) + b3.T, 0.0)
    return jnp.dot(h, w4, precision=hp) + b4


if __name__ == "__main__":
    key = jax.random.PRNGKey(0)
    key, kx = jax.random.split(key)

    batch = 8
    input_dim = 16
    x = jax.random.normal(kx, (batch, input_dim), jnp.float32)
    params = init_params(key, input_dim)

    out = jax.block_until_ready(price_model_forward(x, params))
    ref = reference_forward(x, params)
    assert out.shape == (batch, 1)
    assert jnp.allclose(out, ref, atol=1e-3, rtol=1e-3)

    # Multi-tile + ragged-batch path (grid of 2 tiles, no jnp.pad: the partial
    # last block is handled by Pallas masking; padded output cols sliced off).
    key, kx2 = jax.random.split(key)
    x2 = jax.random.normal(kx2, (1000, input_dim), jnp.float32)
    out2 = jax.block_until_ready(price_model_forward(x2, params))
    ref2 = reference_forward(x2, params)
    assert out2.shape == (1000, 1)
    assert jnp.allclose(out2, ref2, atol=1e-3, rtol=1e-3)

    print("KERNEL_OK")
</pallas_src>

<mosaic_0001>
module attributes {stable_mosaic.version = 11 : i64} {
  func.func @_mlp_kernel(%arg0: i32, %arg1: memref<16x128xf32, #tpu.memory_space<vmem>>, %arg2: memref<128x16xf32, #tpu.memory_space<vmem>>, %arg3: memref<128x1xf32, #tpu.memory_space<vmem>>, %arg4: memref<64x128xf32, #tpu.memory_space<vmem>>, %arg5: memref<64x1xf32, #tpu.memory_space<vmem>>, %arg6: memref<32x64xf32, #tpu.memory_space<vmem>>, %arg7: memref<32x1xf32, #tpu.memory_space<vmem>>, %arg8: memref<32x1xf32, #tpu.memory_space<vmem>>, %arg9: memref<1x1xf32, #tpu.memory_space<vmem>>, %arg10: memref<1x128xf32, #tpu.memory_space<vmem>>) attributes {dimension_semantics = [#tpu.dimension_semantics<parallel>], iteration_bounds = array<i64: 1>, scalar_prefetch = 0 : i64, scratch_operands = 0 : i64, tpu.core_type = #tpu.core_type<tc>, window_params = [{transform_indices = @transform_0, window_bounds = array<i64: 16, 128>}, {pipeline_mode = #tpu.pipeline_mode<synchronous>, transform_indices = @transform_1, window_bounds = array<i64: 128, 16>}, {pipeline_mode = #tpu.pipeline_mode<synchronous>, transform_indices = @transform_2, window_bounds = array<i64: 128, 1>}, {pipeline_mode = #tpu.pipeline_mode<synchronous>, transform_indices = @transform_3, window_bounds = array<i64: 64, 128>}, {pipeline_mode = #tpu.pipeline_mode<synchronous>, transform_indices = @transform_4, window_bounds = array<i64: 64, 1>}, {pipeline_mode = #tpu.pipeline_mode<synchronous>, transform_indices = @transform_5, window_bounds = array<i64: 32, 64>}, {pipeline_mode = #tpu.pipeline_mode<synchronous>, transform_indices = @transform_6, window_bounds = array<i64: 32, 1>}, {pipeline_mode = #tpu.pipeline_mode<synchronous>, transform_indices = @transform_7, window_bounds = array<i64: 32, 1>}, {pipeline_mode = #tpu.pipeline_mode<synchronous>, transform_indices = @transform_8, window_bounds = array<i64: 1, 1>}, {transform_indices = @transform_9, window_bounds = array<i64: 1, 128>}]} {
    %c0 = arith.constant 0 : index
    %c0_0 = arith.constant 0 : index
    %0 = vector.load %arg1[%c0, %c0_0] : memref<16x128xf32, #tpu.memory_space<vmem>>, vector<16x128xf32>
    %c0_1 = arith.constant 0 : index
    %c0_2 = arith.constant 0 : index
    %1 = vector.load %arg2[%c0_1, %c0_2] : memref<128x16xf32, #tpu.memory_space<vmem>>, vector<128x16xf32>
    %cst = arith.constant dense<0.000000e+00> : vector<128x128xf32>
    %2 = tpu.matmul %1, %0, %cst {dimension_numbers = #tpu.dot_dimension_numbers<[1], [0], [0], [1], [0, 0, 1, 1], [], []>, precision = #tpu.contract_precision<fp32>} : vector<128x16xf32>, vector<16x128xf32>, vector<128x128xf32> -> vector<128x128xf32>
    %c0_3 = arith.constant 0 : index
    %c0_4 = arith.constant 0 : index
    %3 = vector.load %arg3[%c0_3, %c0_4] : memref<128x1xf32, #tpu.memory_space<vmem>>, vector<128x1xf32>
    %4 = vector.broadcast %3 : vector<128x1xf32> to vector<128x128xf32>
    %5 = arith.addf %2, %4 : vector<128x128xf32>
    %cst_5 = arith.constant 0.000000e+00 : f32
    %6 = vector.broadcast %cst_5 : f32 to vector<128x128xf32>
    %7 = arith.maximumf %5, %6 : vector<128x128xf32>
    %c0_6 = arith.constant 0 : index
    %c0_7 = arith.constant 0 : index
    %8 = vector.load %arg4[%c0_6, %c0_7] : memref<64x128xf32, #tpu.memory_space<vmem>>, vector<64x128xf32>
    %cst_8 = arith.constant dense<0.000000e+00> : vector<64x128xf32>
    %9 = tpu.matmul %8, %7, %cst_8 {dimension_numbers = #tpu.dot_dimension_numbers<[1], [0], [0], [1], [0, 0, 1, 1], [], []>, precision = #tpu.contract_precision<fp32>} : vector<64x128xf32>, vector<128x128xf32>, vector<64x128xf32> -> vector<64x128xf32>
    %c0_9 = arith.constant 0 : index
    %c0_10 = arith.constant 0 : index
    %10 = vector.load %arg5[%c0_9, %c0_10] : memref<64x1xf32, #tpu.memory_space<vmem>>, vector<64x1xf32>
    %11 = vector.broadcast %10 : vector<64x1xf32> to vector<64x128xf32>
    %12 = arith.addf %9, %11 : vector<64x128xf32>
    %cst_11 = arith.constant 0.000000e+00 : f32
    %13 = vector.broadcast %cst_11 : f32 to vector<64x128xf32>
    %14 = arith.maximumf %12, %13 : vector<64x128xf32>
    %c0_12 = arith.constant 0 : index
    %c0_13 = arith.constant 0 : index
    %15 = vector.load %arg6[%c0_12, %c0_13] : memref<32x64xf32, #tpu.memory_space<vmem>>, vector<32x64xf32>
    %cst_14 = arith.constant dense<0.000000e+00> : vector<32x128xf32>
    %16 = tpu.matmul %15, %14, %cst_14 {dimension_numbers = #tpu.dot_dimension_numbers<[1], [0], [0], [1], [0, 0, 1, 1], [], []>, precision = #tpu.contract_precision<fp32>} : vector<32x64xf32>, vector<64x128xf32>, vector<32x128xf32> -> vector<32x128xf32>
    %c0_15 = arith.constant 0 : index
    %c0_16 = arith.constant 0 : index
    %17 = vector.load %arg7[%c0_15, %c0_16] : memref<32x1xf32, #tpu.memory_space<vmem>>, vector<32x1xf32>
    %18 = vector.broadcast %17 : vector<32x1xf32> to vector<32x128xf32>
    %19 = arith.addf %16, %18 : vector<32x128xf32>
    %cst_17 = arith.constant 0.000000e+00 : f32
    %20 = vector.broadcast %cst_17 : f32 to vector<32x128xf32>
    %21 = arith.maximumf %19, %20 : vector<32x128xf32>
    %c0_18 = arith.constant 0 : index
    %c0_19 = arith.constant 0 : index
    %22 = vector.load %arg8[%c0_18, %c0_19] : memref<32x1xf32, #tpu.memory_space<vmem>>, vector<32x1xf32>
    %23 = vector.broadcast %22 : vector<32x1xf32> to vector<32x128xf32>
    %24 = arith.mulf %21, %23 : vector<32x128xf32>
    %cst_20 = arith.constant dense<0.000000e+00> : vector<128xf32>
    %25 = vector.multi_reduction <add>, %24, %cst_20 [0] : vector<32x128xf32> to vector<128xf32>
    %26 = vector.shape_cast %25 : vector<128xf32> to vector<1x128xf32>
    %c0_21 = arith.constant 0 : index
    %c0_22 = arith.constant 0 : index
    %27 = vector.load %arg9[%c0_21, %c0_22] : memref<1x1xf32, #tpu.memory_space<vmem>>, vector<1x1xf32>
    %28 = vector.broadcast %27 : vector<1x1xf32> to vector<1x128xf32>
    %29 = arith.addf %26, %28 : vector<1x128xf32>
    %c0_23 = arith.constant 0 : index
    %c0_24 = arith.constant 0 : index
    %30 = vector.load %arg10[%c0_23, %c0_24] : memref<1x128xf32, #tpu.memory_space<vmem>>, vector<1x128xf32>
    tpu.vector_store %arg10[%c0_23, %c0_24], %29 {strides = array<i32>} : memref<1x128xf32, #tpu.memory_space<vmem>>, vector<1x128xf32>,
    return
  }
  func.func @transform_0(%arg0: i32) -> (i32, i32) {
    %c0_i32 = arith.constant 0 : i32
    %c0_i32_0 = arith.constant 0 : i32
    return %c0_i32, %arg0 : i32, i32
  }
  func.func @transform_1(%arg0: i32) -> (i32, i32) {
    %c0_i32 = arith.constant 0 : i32
    %c0_i32_0 = arith.constant 0 : i32
    %c0_i32_1 = arith.constant 0 : i32
    return %c0_i32, %c0_i32_0 : i32, i32
  }
  func.func @transform_2(%arg0: i32) -> (i32, i32) {
    %c0_i32 = arith.constant 0 : i32
    %c0_i32_0 = arith.constant 0 : i32
    %c0_i32_1 = arith.constant 0 : i32
    return %c0_i32, %c0_i32_0 : i32, i32
  }
  func.func @transform_3(%arg0: i32) -> (i32, i32) {
    %c0_i32 = arith.constant 0 : i32
    %c0_i32_0 = arith.constant 0 : i32
    %c0_i32_1 = arith.constant 0 : i32
    return %c0_i32, %c0_i32_0 : i32, i32
  }
  func.func @transform_4(%arg0: i32) -> (i32, i32) {
    %c0_i32 = arith.constant 0 : i32
    %c0_i32_0 = arith.constant 0 : i32
    %c0_i32_1 = arith.constant 0 : i32
    return %c0_i32, %c0_i32_0 : i32, i32
  }
  func.func @transform_5(%arg0: i32) -> (i32, i32) {
    %c0_i32 = arith.constant 0 : i32
    %c0_i32_0 = arith.constant 0 : i32
    %c0_i32_1 = arith.constant 0 : i32
    return %c0_i32, %c0_i32_0 : i32, i32
  }
  func.func @transform_6(%arg0: i32) -> (i32, i32) {
    %c0_i32 = arith.constant 0 : i32
    %c0_i32_0 = arith.constant 0 : i32
    %c0_i32_1 = arith.constant 0 : i32
    return %c0_i32, %c0_i32_0 : i32, i32
  }
  func.func @transform_7(%arg0: i32) -> (i32, i32) {
    %c0_i32 = arith.constant 0 : i32
    %c0_i32_0 = arith.constant 0 : i32
    %c0_i32_1 = arith.constant 0 : i32
    return %c0_i32, %c0_i32_0 : i32, i32
  }
  func.func @transform_8(%arg0: i32) -> (i32, i32) {
    %c0_i32 = arith.constant 0 : i32
    %c0_i32_0 = arith.constant 0 : i32
    %c0_i32_1 = arith.constant 0 : i32
    return %c0_i32, %c0_i32_0 : i32, i32
  }
  func.func @transform_9(%arg0: i32) -> (i32, i32) {
    %c0_i32 = arith.constant 0 : i32
    %c0_i32_0 = arith.constant 0 : i32
    return %c0_i32, %arg0 : i32, i32
  }
}

</mosaic_0001>

<bundles_post_ra>
// kernel: tpu_custom_call.1
= control target key start
LH: loop header
LB: loop body
LE: loop exit
PB: predicated region body
PF: predicated region fallthrough
CT: control target
= control target key end

     0   :  { %s2926_s0 = inlined_call_operand.vmem [shape: f32[16,8], index: 0, kind: input, shape index: {}]   ;;  %s2927_s1 = inlined_call_operand.vmem [shape: f32[128,16], index: 1, kind: input, shape index: {}]   ;;  %s2928_s2 = inlined_call_operand.vmem [shape: f32[128,1], index: 2, kind: input, shape index: {}]   ;;  %s2929_s3 = inlined_call_operand.vmem [shape: f32[64,128], index: 3, kind: input, shape index: {}]   ;;  %s2930_s4 = inlined_call_operand.vmem [shape: f32[64,1], index: 4, kind: input, shape index: {}]   ;;  %s2931_s5 = inlined_call_operand.vmem [shape: f32[32,64], index: 5, kind: input, shape index: {}]   ;;  %s2932_s6 = inlined_call_operand.vmem [shape: f32[32,1], index: 6, kind: input, shape index: {}]   ;;  %s2933_s7 = inlined_call_operand.vmem [shape: f32[32,1], index: 7, kind: input, shape index: {}]   ;;  %s2934_s8 = inlined_call_operand.<no memory space> [shape: f32[1,1], index: 8, kind: input, shape index: {}]   ;;  %s2935_s9 = inlined_call_operand.hbm [shape: f32[1,8], index: 9, kind: output, shape index: {}]  }
   0x1   :  { %v14_v0 = vstv %s2934_s8 }
   0x2   :  { %15 = vst [vmem:[#allocation2] sm:$0x1] %v14_v0 }
   0x3   :  { %v68_v1 = vld [vmem:[%s2928_s2 + $0x78] sm:$0xff]  ;;  %v66_v2 = vld [vmem:[%s2928_s2 + $0x68] sm:$0xff]  ;;  %vm149_vm0 = vcmask 130048   ;;  %v1932_v4 = vmov 0   ;;  %v35_v6 = vld [vmem:[%s2926_s0] sm:$0xff] }
   0x4   :  { %v36_v3 = vld [vmem:[%s2926_s0 + $0x8] sm:$0xff]  ;;  %1903 = vset.pattern.permute.xlu0 %v1932_v4  ;;  %1904 = vset.pattern.permute.xlu1 %v1932_v4  ;;  %v37_v7 = vld [vmem:[%s2927_s1] sm:$0xff]  ;;  %v2004_v8 = vand.u32 4294901760, %v35_v6  ;;  %v51_v10 = vld [vmem:[%s2927_s1 + $0x70] sm:$0xff] }
   0x5   :  { %v1996_v5 = vand.u32 4294901760, %v36_v3  ;;  %146 = vperm.xlu0 %1903, %v68_v1   ;;  %136 = vperm.xlu1 %1904, %v66_v2   ;;  %v151_v9 = vsel %vm149_vm0, %v37_v7, 0  ;;  %v193_v13 = vsel %vm149_vm0, %v51_v10, 0  ;;  %v38_v14 = vld [vmem:[%s2927_s1 + $0x8] sm:$0xff]  ;;  %v52_v15 = vld [vmem:[%s2927_s1 + $0x78] sm:$0xff]  ;;  %v39_v21 = vld [vmem:[%s2927_s1 + $0x10] sm:$0xff] }
   0x6   :  { %v2013_v12 = vand.u32 4294901760, %v151_v9  ;;  %v64_v16 = vld [vmem:[%s2928_s2 + $0x58] sm:$0xff]  ;;  %v2025_v17 = vand.u32 4294901760, %v193_v13  ;;  %v366_v18 = vsub.f32 %v35_v6, %v2004_v8  ;;  %v154_v19 = vsel %vm149_vm0, %v38_v14, 0  ;;  %1905 = vset.pattern.permute.xlu2 %v1932_v4 }
   0x7   :  { %213 = vmatpush.msra.mxu0 %v1996_v5  ;;  %1897 = vmatpush.msra.mxu2 %v1996_v5  ;;  %v360_v11 = vsub.f32 %v36_v3, %v1996_v5  ;;  %v196_v20 = vsel %vm149_vm0, %v52_v15, 0  ;;  %v2038_v24 = vand.u32 4294901760, %v154_v19  ;;  %v157_v28 = vsel %vm149_vm0, %v39_v21, 0 }
   0x8   :  { %v2036_v23 = vsub.f32 %v151_v9, %v2013_v12  ;;  %v2040_v25 = vand.u32 4294901760, %v196_v20  ;;  %v2043_v26 = vsub.f32 %v193_v13, %v2025_v17  ;;  %v367_v27 = vand.u32 4294901760, %v366_v18  ;;  %126 = vperm.xlu2 %1905, %v64_v16  }
   0x9   :  { %215 = vmatpush.msra.mxu0 %v2004_v8  ;;  %1898 = vmatpush.msra.mxu2 %v2004_v8  ;;  %v361_v22 = vand.u32 4294901760, %v360_v11 }
   0xb   :  { %452 = vmatpush.msrb.mxu2 %v360_v11 }
   0xc   :  { %16 = vsyncpa [#allocation4], 0  ;;  %v67_v29 = vld [vmem:[%s2928_s2 + $0x70] sm:$0xff]  ;;  %v362_v30 = vsub.f32 %v360_v11, %v361_v22  ;;  %v218_v31 = vand.u32 4294901760, %v2036_v23  ;;  %v65_v32 = vld [vmem:[%s2928_s2 + $0x60] sm:$0xff]  ;;  %v2054_v33 = vsub.f32 %v154_v19, %v2038_v24  ;;  %v2057_v34 = vsub.f32 %v196_v20, %v2040_v25  ;;  %669 = vmatpush.msrb.mxu0 %v361_v22 }
   0xd   :  { %v330_v35 = vand.u32 4294901760, %v2043_v26  ;;  %v368_v36 = vsub.f32 %v366_v18, %v367_v27  ;;  %455 = vmatpush.msrb.mxu2 %v366_v18  ;;  %v2064_v40 = vand.u32 4294901760, %v157_v28  ;;  %141 = vperm.xlu0 %1903, %v67_v29   ;;  %v40_v45 = vld [vmem:[%s2927_s1 + $0x18] sm:$0xff]  ;;  %v63_v49 = vld [vmem:[%s2928_s2 + $0x50] sm:$0xff]  ;;  %v62_v52 = vld [vmem:[%s2928_s2 + $0x48] sm:$0xff]  ;;  %vm1488_vm1 = vcmask 523264  }
   0xe   :  { %v363_v37 = vand.u32 4294901760, %v362_v30  ;;  %v219_v38 = vsub.f32 %v2036_v23, %v218_v31  ;;  %v226_v39 = vand.u32 4294901760, %v2054_v33  ;;  %673 = vmatpush.msrb.mxu0 %v367_v27  ;;  %131 = vperm.xlu1 %1904, %v65_v32   ;;  %v338_v43 = vand.u32 4294901760, %v2057_v34  ;;  %v61_v53 = vld [vmem:[%s2928_s2 + $0x40] sm:$0xff]  ;;  %v60_v61 = vld [vmem:[%s2928_s2 + $0x38] sm:$0xff]  ;;  %v59_v63 = vld [vmem:[%s2928_s2 + $0x30] sm:$0xff] }
   0xf   :  { %v331_v41 = vsub.f32 %v2043_v26, %v330_v35  ;;  %v369_v42 = vand.u32 4294901760, %v368_v36  ;;  %v2077_v48 = vsub.f32 %v157_v28, %v2064_v40  ;;  %v160_v51 = vsel %vm149_vm0, %v40_v45, 0  ;;  %v41_v58 = vld [vmem:[%s2927_s1 + $0x20] sm:$0xff]  ;;  %v58_v0 = vld [vmem:[%s2928_s2 + $0x28] sm:$0xff]  ;;  %v56_v9 = vld [vmem:[%s2928_s2 + $0x18] sm:$0xff] }
  0x10   :  { %364 = vmatpush.msra.mxu1 %v363_v37  ;;  %1899 = vmatpush.msra.mxu3 %v363_v37  ;;  %v220_v44 = vand.u32 4294901760, %v219_v38  ;;  %v227_v47 = vsub.f32 %v2054_v33, %v226_v39  ;;  %v339_v50 = vsub.f32 %v2057_v34, %v338_v43  ;;  %v2096_v56 = vand.u32 4294901760, %v160_v51  ;;  %v42_v4 = vld [vmem:[%s2927_s1 + $0x28] sm:$0xff]  ;;  %v57_v7 = vld [vmem:[%s2928_s2 + $0x20] sm:$0xff]  ;;  %v55_v10 = vld [vmem:[%s2928_s2 + $0x10] sm:$0xff] }
  0x11   :  { %v332_v46 = vand.u32 4294901760, %v331_v41  ;;  %121 = vperm.xlu2 %1905, %v63_v49   ;;  %v234_v55 = vand.u32 4294901760, %v2077_v48  ;;  %v163_v62 = vsel %vm149_vm0, %v41_v58, 0  ;;  %v43_v15 = vld [vmem:[%s2927_s1 + $0x30] sm:$0xff]  ;;  %v54_v19 = vld [vmem:[%s2928_s2 + $0x8] sm:$0xff]  ;;  %v53_v21 = vld [vmem:[%s2928_s2] sm:$0xff] }
  0x12   :  { %221 = vmatmul.f32.vlgmr.msra.gmra.mxu0 %v220_v44  ;;  %370 = vmatpush.msra.mxu1 %v369_v42  ;;  %v228_v54 = vand.u32 4294901760, %v227_v47  ;;  %v340_v57 = vand.u32 4294901760, %v339_v50  ;;  %v2108_v60 = vsub.f32 %v160_v51, %v2096_v56  ;;  %v2123_v3 = vand.u32 4294901760, %v163_v62  ;;  %v44_v28 = vld [vmem:[%s2927_s1 + $0x38] sm:$0xff]  ;;  %v45_v37 = vld [vmem:[%s2927_s1 + $0x40] sm:$0xff] }
  0x13   :  { %333 = vmatmul.f32.vlgmr.msra.gmra.mxu2 %v332_v46  ;;  %1900 = vmatpush.msra.mxu3 %v369_v42  ;;  %v235_v59 = vsub.f32 %v2077_v48, %v234_v55  ;;  %v169_v20 = vsel %vm149_vm0, %v43_v15, 0  ;;  %v175_v41 = vsel %vm149_vm0, %v45_v37, 0  ;;  %v46_v46 = vld [vmem:[%s2927_s1 + $0x48] sm:$0xff] }
  0x14   :  { %372 = vmatmul.f32.vlgmr.msra.gmra.mxu1 %v2013_v12  ;;  %428 = vmatmul.f32.vlgmr.msra.gmra.mxu3 %v2025_v17  ;;  %v242_v2 = vand.u32 4294901760, %v2108_v60  ;;  %v249_v6 = vsub.f32 %v163_v62, %v2123_v3  ;;  %v2161_v27 = vand.u32 4294901760, %v169_v20  ;;  %v2181_v45 = vand.u32 4294901760, %v175_v41 }
  0x15   :  { %552 = vmatpush.msrb.mxu3 %v1996_v5  ;;  %754 = vmatpush.msrb.mxu1 %v1996_v5  ;;  %v236_v1 = vand.u32 4294901760, %v235_v59  ;;  %v178_v49 = vsel %vm149_vm0, %v46_v46, 0 }
  0x16   :  { %116 = vperm.xlu0 %1903, %v62_v52   ;;  %111 = vperm.xlu1 %1904, %v61_v53   ;;  %v243_v5 = vsub.f32 %v2108_v60, %v242_v2  ;;  %v250_v13 = vand.u32 4294901760, %v249_v6  ;;  %v265_v30 = vsub.f32 %v169_v20, %v2161_v27  ;;  %v2189_v52 = vand.u32 4294901760, %v178_v49  ;;  %v47_v53 = vld [vmem:[%s2927_s1 + $0x50] sm:$0xff] }
  0x17   :  { %554 = vmatpush.msrb.mxu3 %v2004_v8  ;;  %756 = vmatpush.msrb.mxu1 %v2004_v8  ;;  %v166_v8 = vsel %vm149_vm0, %v42_v4, 0 }
  0x18   :  { %v244_v11 = vand.u32 4294901760, %v243_v5  ;;  %v2144_v14 = vand.u32 4294901760, %v166_v8  ;;  %v251_v16 = vsub.f32 %v249_v6, %v250_v13  ;;  %v49_v5 = vld [vmem:[%s2927_s1 + $0x60] sm:$0xff] }
  0x19   :  { %106 = vperm.xlu2 %1905, %v60_v61   ;;  %v48_v61 = vld [vmem:[%s2927_s1 + $0x58] sm:$0xff] }
  0x1a   :  { %229 = vmatmul.f32.gmra.mxu0 %v228_v54  ;;  %v257_v18 = vsub.f32 %v166_v8, %v2144_v14  ;;  %v252_v22 = vand.u32 4294901760, %v251_v16  ;;  %v187_v8 = vsel %vm149_vm0, %v49_v5, 0  ;;  %v849_v5 = vld [vmem:[%s2930_s4 + $0x18] sm:$0xff] }
  0x1b   :  { %341 = vmatmul.f32.gmra.mxu2 %v340_v57  ;;  %v181_v57 = vsel %vm149_vm0, %v47_v53, 0  ;;  %v847_v53 = vld [vmem:[%s2930_s4 + $0x8] sm:$0xff] }
  0x1c   :  { %376 = vmatmul.f32.gmra.mxu1 %v2038_v24  ;;  %432 = vmatmul.f32.gmra.mxu3 %v2040_v25 }
  0x1e   :  { %101 = vperm.xlu0 %1903, %v59_v63   ;;  %96 = vperm.xlu1 %1904, %v58_v0   ;;  %v184_v0 = vsel %vm149_vm0, %v48_v61, 0 }
  0x1f   :  { %v2205_v4 = vand.u32 4294901760, %v184_v0 }
  0x21   :  { %91 = vperm.xlu2 %1905, %v57_v7   ;;  %v305_v7 = vsub.f32 %v184_v0, %v2205_v4 }
  0x22   :  { %237 = vmatmul.f32.gmra.mxu0 %v236_v1 }
  0x23   :  { %458 = vmatmul.f32.vlgmr.msrb.gmra.mxu2 %v2036_v23  ;;  %v258_v23 = vand.u32 4294901760, %v257_v18 }
  0x24   :  { %380 = vmatmul.f32.gmra.mxu1 %v2064_v40  ;;  %558 = vmatmul.f32.vlgmr.msrb.gmra.mxu3 %v218_v31  ;;  %v172_v31 = vsel %vm149_vm0, %v44_v28, 0 }
  0x25   :  { %v259_v29 = vsub.f32 %v257_v18, %v258_v23  ;;  %v2172_v36 = vand.u32 4294901760, %v172_v31 }
  0x26   :  { %86 = vperm.xlu0 %1903, %v56_v9   ;;  %81 = vperm.xlu1 %1904, %v55_v10   ;;  %v306_v10 = vand.u32 4294901760, %v305_v7 }
  0x27   :  { %v260_v32 = vand.u32 4294901760, %v259_v29 }
  0x28   :  { %v307_v15 = vsub.f32 %v305_v7, %v306_v10 }
  0x29   :  { %76 = vperm.xlu2 %1905, %v54_v19  }
  0x2a   :  { %245 = vmatmul.f32.gmra.mxu0 %v244_v11  ;;  %v2213_v11 = vand.u32 4294901760, %v187_v8  ;;  %v308_v19 = vand.u32 4294901760, %v307_v15 }
  0x2b   :  { %463 = vmatmul.f32.gmra.mxu2 %v2054_v33  ;;  %v266_v33 = vand.u32 4294901760, %v265_v30 }
  0x2c   :  { %384 = vmatmul.f32.gmra.mxu1 %v2096_v56  ;;  %564 = vmatmul.f32.gmra.mxu3 %v226_v39  ;;  %v273_v39 = vsub.f32 %v172_v31, %v2172_v36  ;;  %v313_v16 = vsub.f32 %v187_v8, %v2213_v11  ;;  %v1838_v8 = vld [vmem:[%s2933_s7 + $0x18] sm:$0xff] }
  0x2d   :  { %v267_v38 = vsub.f32 %v265_v30, %v266_v33 }
  0x2e   :  { %71 = vperm.xlu0 %1903, %v53_v21   ;;  %v274_v44 = vand.u32 4294901760, %v273_v39  ;;  %v314_v20 = vand.u32 4294901760, %v313_v16 }
  0x2f   :  { %v268_v42 = vand.u32 4294901760, %v267_v38 }
  0x30   :  { %v275_v47 = vsub.f32 %v273_v39, %v274_v44 }
  0x32   :  { %253 = vmatmul.f32.gmra.mxu0 %v252_v22  ;;  %v276_v50 = vand.u32 4294901760, %v275_v47  ;;  %v315_v22 = vsub.f32 %v313_v16, %v314_v20 }
  0x33   :  { %468 = vmatmul.f32.gmra.mxu2 %v2077_v48  ;;  %v281_v48 = vsub.f32 %v175_v41, %v2181_v45 }
  0x34   :  { %388 = vmatmul.f32.gmra.mxu1 %v2123_v3  ;;  %570 = vmatmul.f32.gmra.mxu3 %v234_v55  ;;  %v289_v55 = vsub.f32 %v178_v49, %v2189_v52  ;;  %v316_v28 = vand.u32 4294901760, %v315_v22 }
  0x35   :  { %v282_v51 = vand.u32 4294901760, %v281_v48 }
  0x36   :  { %v290_v59 = vand.u32 4294901760, %v289_v55 }
  0x37   :  { %v283_v54 = vsub.f32 %v281_v48, %v282_v51 }
  0x38   :  { %v291_v62 = vsub.f32 %v289_v55, %v290_v59 }
  0x39   :  { %v284_v58 = vand.u32 4294901760, %v283_v54 }
  0x3a   :  { %261 = vmatmul.f32.gmra.mxu0 %v260_v32  ;;  %v292_v1 = vand.u32 4294901760, %v291_v62  ;;  %v852_v62 = vld [vmem:[%s2930_s4 + $0x30] sm:$0xff] }
  0x3b   :  { %473 = vmatmul.f32.gmra.mxu2 %v2108_v60  ;;  %v2197_v60 = vand.u32 4294901760, %v181_v57  ;;  %886 = vperm.xlu2 %1905, %v852_v62  }
  0x3c   :  { %392 = vmatmul.f32.gmra.mxu1 %v2144_v14  ;;  %576 = vmatmul.f32.gmra.mxu3 %v242_v2 }
  0x3d   :  { %v297_v63 = vsub.f32 %v181_v57, %v2197_v60 }
  0x3f   :  { %v298_v2 = vand.u32 4294901760, %v297_v63 }
  0x42   :  { %269 = vmatmul.f32.gmra.mxu0 %v268_v42 }
  0x43   :  { %478 = vmatmul.f32.gmra.mxu2 %v249_v6  ;;  %v299_v6 = vsub.f32 %v297_v63, %v298_v2  ;;  %871 = vperm.xlu2 %1905, %v849_v5  }
  0x44   :  { %396 = vmatmul.f32.gmra.mxu1 %v2161_v27  ;;  %582 = vmatmul.f32.gmra.mxu3 %v250_v13  ;;  %v50_v13 = vld [vmem:[%s2927_s1 + $0x68] sm:$0xff] }
  0x45   :  { %v300_v9 = vand.u32 4294901760, %v299_v6  ;;  %v1837_v6 = vld [vmem:[%s2933_s7 + $0x10] sm:$0xff] }
  0x4a   :  { %277 = vmatmul.f32.gmra.mxu0 %v276_v50 }
  0x4b   :  { %483 = vmatmul.f32.gmra.mxu2 %v257_v18  ;;  %v190_v18 = vsel %vm149_vm0, %v50_v13, 0  ;;  %v846_v13 = vld [vmem:[%s2930_s4] sm:$0xff] }
  0x4c   :  { %400 = vmatmul.f32.gmra.mxu1 %v2172_v36  ;;  %588 = vmatmul.f32.gmra.mxu3 %v258_v23  ;;  %v2221_v21 = vand.u32 4294901760, %v190_v18 }
  0x4d   :  { %856 = vperm.xlu2 %1905, %v846_v13  }
  0x4e   :  { %v321_v23 = vsub.f32 %v190_v18, %v2221_v21  ;;  %v1466_v18 = vld [vmem:[%s2932_s6 + $0x10] sm:$0xff] }
  0x50   :  { %v322_v29 = vand.u32 4294901760, %v321_v23 }
  0x52   :  { %285 = vmatmul.f32.gmra.mxu0 %v284_v58  ;;  %v1465_v58 = vld [vmem:[%s2932_s6 + $0x8] sm:$0xff] }
  0x53   :  { %488 = vmatmul.f32.gmra.mxu2 %v265_v30  ;;  %v323_v30 = vsub.f32 %v321_v23, %v322_v29 }
  0x54   :  { %404 = vmatmul.f32.gmra.mxu1 %v2181_v45  ;;  %594 = vmatmul.f32.gmra.mxu3 %v266_v33 }
  0x55   :  { %v324_v31 = vand.u32 4294901760, %v323_v30  ;;  %1480 = vperm.xlu2 %1905, %v1466_v18  }
  0x5a   :  { %293 = vmatmul.f32.gmra.mxu0 %v292_v1  ;;  %v1835_v1 = vld [vmem:[%s2933_s7] sm:$0xff] }
  0x5b   :  { %493 = vmatmul.f32.gmra.mxu2 %v273_v39 }
  0x5c   :  { %408 = vmatmul.f32.gmra.mxu1 %v2189_v52  ;;  %600 = vmatmul.f32.gmra.mxu3 %v274_v44 }
  0x62   :  { %301 = vmatmul.f32.gmra.mxu0 %v300_v9 }
  0x63   :  { %498 = vmatmul.f32.gmra.mxu2 %v281_v48 }
  0x64   :  { %412 = vmatmul.f32.gmra.mxu1 %v2197_v60  ;;  %606 = vmatmul.f32.gmra.mxu3 %v282_v51  ;;  %v848_v51 = vld [vmem:[%s2930_s4 + $0x10] sm:$0xff] }
  0x6a   :  { %309 = vmatmul.f32.gmra.mxu0 %v308_v19 }
  0x6b   :  { %503 = vmatmul.f32.gmra.mxu2 %v289_v55  ;;  %v1464_v55 = vld [vmem:[%s2932_s6] sm:$0xff] }
  0x6c   :  { %416 = vmatmul.f32.gmra.mxu1 %v2205_v4  ;;  %612 = vmatmul.f32.gmra.mxu3 %v290_v59 }
  0x72   :  { %317 = vmatmul.f32.gmra.mxu0 %v316_v28 }
  0x73   :  { %508 = vmatmul.f32.gmra.mxu2 %v297_v63 }
  0x74   :  { %420 = vmatmul.f32.gmra.mxu1 %v2213_v11  ;;  %618 = vmatmul.f32.gmra.mxu3 %v298_v2 }
  0x77   :  { %v2226_v32 = vpop.permute.xlu0 %146 }
  0x7a   :  { %325 = vmatmul.f32.gmra.mxu0 %v324_v31  ;;  %v1872_v31 = vld [vmem:[#allocation2] sm:$0x1] }
  0x7b   :  { %513 = vmatmul.f32.gmra.mxu2 %v305_v7 }
  0x7c   :  { %424 = vmatmul.f32.gmra.mxu1 %v2221_v21  ;;  %624 = vmatmul.f32.gmra.mxu3 %v306_v10 }
  0x7f   :  { %v2229_v33 = vpop.permute.xlu0 %141 }
  0x82   :  { %675 = vmatmul.f32.vlgmr.msrb.gmra.mxu0 %v2013_v12 }
  0x83   :  { %518 = vmatmul.f32.gmra.mxu2 %v313_v16 }
  0x84   :  { %630 = vmatmul.f32.gmra.mxu3 %v314_v20  ;;  %758 = vmatmul.f32.vlgmr.msrb.gmra.mxu1 %v2013_v12 }
  0x88   :  { %v2233_v37 = vpop.permute.xlu0 %116 }
  0x8a   :  { %679 = vmatmul.f32.gmra.mxu0 %v2038_v24 }
  0x8b   :  { %523 = vmatmul.f32.gmra.mxu2 %v321_v23  ;;  %v1836_v23 = vld [vmem:[%s2933_s7 + $0x8] sm:$0xff] }
  0x8c   :  { %636 = vmatmul.f32.gmra.mxu3 %v322_v29  ;;  %762 = vmatmul.f32.gmra.mxu1 %v2038_v24 }
  0x8d   :  { %1846 = vperm.xlu2 %1905, %v1836_v23  }
  0x8f   :  { %v222_v38 = vpop.f32.mrf.mxu0 }
  0x90   :  { %v2237_v41 = vpop.permute.xlu0 %101 }
  0x91   :  { %v373_v39 = vpop.f32.mrf.mxu1 }
  0x92   :  { %683 = vmatmul.f32.gmra.mxu0 %v2064_v40 }
  0x93   :  { %528 = vmatmul.f32.gmra.mxu2 %v2043_v26 }
  0x94   :  { %642 = vmatmul.f32.gmra.mxu3 %v330_v35  ;;  %766 = vmatmul.f32.gmra.mxu1 %v2064_v40 }
  0x95   :  { %1875 = vperm.xlu2 %1905, %v1872_v31  }
  0x97   :  { %v2244_v12 = vpop.f32.mrf.mxu0  ;;  %v2312_v59 = vpop.f32.mrf.mxu3 }
  0x98   :  { %v2248_v44 = vpop.permute.xlu0 %86 }
  0x99   :  { %v2246_v42 = vpop.f32.mrf.mxu1 }
  0x9a   :  { %687 = vmatmul.f32.gmra.mxu0 %v2096_v56 }
  0x9b   :  { %533 = vmatmul.f32.gmra.mxu2 %v2057_v34 }
  0x9c   :  { %648 = vmatmul.f32.gmra.mxu3 %v338_v43  ;;  %770 = vmatmul.f32.gmra.mxu1 %v2096_v56  ;;  %v853_v43 = vld [vmem:[%s2930_s4 + $0x38] sm:$0xff] }
  0x9d   :  { %891 = vperm.xlu1 %1904, %v853_v43   ;;  %v2403_v43 = vpop.permute.xlu1 %136 }
  0x9f   :  { %v2255_v24 = vpop.f32.mrf.mxu0 }
  0xa0   :  { %v72_v35 = vpop.permute.xlu0 %71 }
  0xa1   :  { %v2257_v26 = vpop.f32.mrf.mxu1  ;;  %v223_v40 = vadd.f32 %v222_v38, %v72_v35  ;;  %v2391_v38 = vpop.permute.xlu2 %126 }
  0xa2   :  { %691 = vmatmul.f32.gmra.mxu0 %v2123_v3 }
  0xa3   :  { %v2260_v46 = vadd.f32 %v373_v39, %v223_v40 }
  0xa4   :  { %774 = vmatmul.f32.gmra.mxu1 %v2123_v3  ;;  %v851_v3 = vld [vmem:[%s2930_s4 + $0x28] sm:$0xff] }
  0xa5   :  { %881 = vperm.xlu0 %1903, %v851_v3  }
  0xa7   :  { %v2263_v47 = vpop.f32.mrf.mxu0 }
  0xa9   :  { %v2265_v48 = vpop.f32.mrf.mxu1  ;;  %v2405_v3 = vpop.permute.xlu2 %121 }
  0xaa   :  { %695 = vmatmul.f32.gmra.mxu0 %v2144_v14 }
  0xac   :  { %778 = vmatmul.f32.gmra.mxu1 %v2144_v14  ;;  %v850_v14 = vld [vmem:[%s2930_s4 + $0x20] sm:$0xff]  ;;  %s1888_s4 = sshll.u32 %s2935_s9, 4  ;;  %s1889_s4 = int_to_ptr.hbm [resolvable:$true] %s1888_s4 }
  0xad   :  { %876 = vperm.xlu1 %1904, %v850_v14   ;;  %866 = vperm.xlu0 %1903, %v848_v51  }
  0xaf   :  { %v2269_v34 = vpop.f32.mrf.mxu0 }
  0xb1   :  { %v2274_v56 = vpop.f32.mrf.mxu1  ;;  %v107_v62 = vpop.permute.xlu2 %106 }
  0xb2   :  { %699 = vmatmul.f32.gmra.mxu0 %v2161_v27 }
  0xb4   :  { %782 = vmatmul.f32.gmra.mxu1 %v2161_v27 }
  0xb5   :  { %861 = vperm.xlu1 %1904, %v847_v53   ;;  %1470 = vperm.xlu0 %1903, %v1464_v55   ;;  %v2411_v55 = vpop.permute.xlu1 %131 }
  0xb7   :  { %v2281_v49 = vpop.f32.mrf.mxu0 }
  0xb9   :  { %v2286_v50 = vpop.f32.mrf.mxu1  ;;  %v92_v13 = vpop.permute.xlu2 %91 }
  0xba   :  { %703 = vmatmul.f32.gmra.mxu0 %v2172_v36  ;;  %v255_v18 = vadd.f32 %v2269_v34, %v92_v13 }
  0xbc   :  { %786 = vmatmul.f32.gmra.mxu1 %v2172_v36  ;;  %v2305_v36 = vpop.f32.mrf.mxu2 }
  0xbd   :  { %1475 = vperm.xlu1 %1904, %v1465_v58  }
  0xbf   :  { %v2293_v27 = vpop.f32.mrf.mxu0 }
  0xc1   :  { %v2298_v54 = vpop.f32.mrf.mxu1 }
  0xc2   :  { %707 = vmatmul.f32.gmra.mxu0 %v2181_v45 }
  0xc4   :  { %790 = vmatmul.f32.gmra.mxu1 %v2181_v45  ;;  %v1467_v45 = vld [vmem:[%s2932_s6 + $0x18] sm:$0xff]  ;;  %v2324_v63 = vpop.f32.mrf.mxu2 }
  0xc5   :  { %1485 = vperm.xlu0 %1903, %v1467_v45   ;;  %1841 = vperm.xlu1 %1904, %v1835_v1  }
  0xc7   :  { %v2307_v57 = vpop.f32.mrf.mxu0 }
  0xc9   :  { %v2314_v61 = vpop.f32.mrf.mxu1 }
  0xca   :  { %711 = vmatmul.f32.gmra.mxu0 %v2189_v52 }
  0xcc   :  { %794 = vmatmul.f32.gmra.mxu1 %v2189_v52  ;;  %v2337_v52 = vpop.f32.mrf.mxu3  ;;  %v2348_v9 = vpop.f32.mrf.mxu2 }
  0xcd   :  { %1851 = vperm.xlu0 %1903, %v1837_v6   ;;  %1856 = vperm.xlu1 %1904, %v1838_v8   ;;  %v112_v6 = vpop.permute.xlu1 %111 }
  0xcf   :  { %v2326_v0 = vpop.f32.mrf.mxu0 }
  0xd1   :  { %v2331_v2 = vpop.f32.mrf.mxu1 }
  0xd2   :  { %715 = vmatmul.f32.gmra.mxu0 %v2197_v60 }
  0xd4   :  { %798 = vmatmul.f32.gmra.mxu1 %v2197_v60  ;;  %v2357_v60 = vpop.f32.mrf.mxu3  ;;  %v2367_v19 = vpop.f32.mrf.mxu2 }
  0xd5   :  { %2936 = vst [vmem:[#allocation6_spill] sm:$0xff] %v2357_v60 }
  0xd6   :  { %2937 = vst [vmem:[#allocation7_spill] sm:$0xff] %v2367_v19 }
  0xd7   :  { %v2343_v7 = vpop.f32.mrf.mxu0 }
  0xd9   :  { %v2350_v10 = vpop.f32.mrf.mxu1 }
  0xda   :  { %719 = vmatmul.f32.gmra.mxu0 %v2205_v4 }
  0xdc   :  { %802 = vmatmul.f32.gmra.mxu1 %v2205_v4  ;;  %v2370_v20 = vpop.f32.mrf.mxu3  ;;  %v2381_v28 = vpop.f32.mrf.mxu2 }
  0xdd   :  { %2938 = vst [vmem:[#allocation8_spill] sm:$0xff] %v2370_v20 }
  0xde   :  { %2939 = vst [vmem:[#allocation9_spill] sm:$0xff] %v2381_v28 }
  0xdf   :  { %v2359_v15 = vpop.f32.mrf.mxu0 }
  0xe1   :  { %v2361_v16 = vpop.f32.mrf.mxu1 }
  0xe2   :  { %723 = vmatmul.f32.gmra.mxu0 %v2213_v11 }
  0xe4   :  { %806 = vmatmul.f32.gmra.mxu1 %v2213_v11  ;;  %v2385_v11 = vpop.f32.mrf.mxu3  ;;  %v2393_v39 = vpop.f32.mrf.mxu2 }
  0xe5   :  { %2940 = vst [vmem:[#allocation10_spill] sm:$0xff] %v2385_v11 }
  0xe7   :  { %v2372_v4 = vpop.f32.mrf.mxu0 }
  0xe9   :  { %v2374_v22 = vpop.f32.mrf.mxu1 }
  0xea   :  { %727 = vmatmul.f32.gmra.mxu0 %v2221_v21 }
  0xec   :  { %810 = vmatmul.f32.gmra.mxu1 %v2221_v21  ;;  %v2400_v40 = vpop.f32.mrf.mxu3 }
  0xed   :  { %2941 = vst [vmem:[#allocation11_spill] sm:$0xff] %v2400_v40 }
  0xef   :  { %v2383_v29 = vpop.f32.mrf.mxu0 }
  0xf1   :  { %v2387_v30 = vpop.f32.mrf.mxu1 }
  0xf2   :  { %731 = vmatmul.f32.gmra.mxu0 %v2025_v17 }
  0xf4   :  { %814 = vmatmul.f32.gmra.mxu1 %v2025_v17  ;;  %v479_v17 = vpop.f32.mrf.mxu2  ;;  %v583_v53 = vpop.f32.mrf.mxu3 }
  0xf7   :  { %v2395_v35 = vpop.f32.mrf.mxu0 }
  0xf9   :  { %v2397_v21 = vpop.f32.mrf.mxu1 }
  0xfa   :  { %735 = vmatmul.f32.gmra.mxu0 %v2040_v25 }
  0xfc   :  { %818 = vmatmul.f32.gmra.mxu1 %v2040_v25  ;;  %v484_v1 = vpop.f32.mrf.mxu2  ;;  %v589_v5 = vpop.f32.mrf.mxu3 }
  0xff   :  { %v2407_v14 = vpop.f32.mrf.mxu0 }
 0x100   :  { %2942 = vst [vmem:[#allocation12_spill] sm:$0xff] %v2407_v14 }
 0x101   :  { %v2409_v51 = vpop.f32.mrf.mxu1 }
 0x102   :  { %2943 = vst [vmem:[#allocation13_spill] sm:$0xff] %v2409_v51  ;;  %v390_v51 = vadd.f32 %v2274_v56, %v255_v18  ;;  %v271_v56 = vadd.f32 %v2293_v27, %v2237_v41 }
 0x104   :  { %v489_v23 = vpop.f32.mrf.mxu2  ;;  %v595_v14 = vpop.f32.mrf.mxu3  ;;  %v480_v20 = vadd.f32 %v479_v17, %v390_v51  ;;  %v398_v17 = vadd.f32 %v2298_v54, %v271_v56  ;;  %v287_v54 = vadd.f32 %v2326_v0, %v112_v6 }
 0x106   :  { %v584_v60 = vadd.f32 %v583_v53, %v480_v20  ;;  %v490_v53 = vadd.f32 %v489_v23, %v398_v17 }
 0x107   :  { %v2413_v58 = vpop.f32.mrf.mxu0 }
 0x108   :  { %2944 = vst [vmem:[#allocation14_spill] sm:$0xff] %v2413_v58 }
 0x109   :  { %v2415_v45 = vpop.f32.mrf.mxu1 }
 0x10a   :  { %2945 = vst [vmem:[#allocation15_spill] sm:$0xff] %v2415_v45  ;;  %v97_v45 = vpop.permute.xlu1 %96 }
 0x10b   :  { %v263_v11 = vadd.f32 %v2281_v49, %v97_v45 }
 0x10f   :  { %v2417_v25 = vpop.f32.mrf.mxu0 }
 0x110   :  { %2946 = vst [vmem:[#allocation16_spill] sm:$0xff] %v2417_v25  ;;  %v494_v25 = vpop.f32.mrf.mxu2 }
 0x111   :  { %v2419_v8 = vpop.f32.mrf.mxu1 }
 0x112   :  { %2947 = vst [vmem:[#allocation17_spill] sm:$0xff] %v2419_v8  ;;  %v394_v8 = vadd.f32 %v2286_v50, %v263_v11  ;;  %v279_v50 = vadd.f32 %v2307_v57, %v107_v62  ;;  %v596_v11 = vadd.f32 %v595_v14, %v490_v53 }
 0x114   :  { %v485_v34 = vadd.f32 %v484_v1, %v394_v8 }
 0x116   :  { %v590_v18 = vadd.f32 %v589_v5, %v485_v34  ;;  %v406_v34 = vadd.f32 %v2331_v2, %v287_v54 }
 0x117   :  { %v2422_v31 = vpop.f32.mrf.mxu0 }
 0x118   :  { %2948 = vst [vmem:[#allocation18_spill] sm:$0xff] %v2422_v31  ;;  %v601_v31 = vpop.f32.mrf.mxu3  ;;  %v499_v49 = vpop.f32.mrf.mxu2 }
 0x119   :  { %v2425_v58 = vpop.f32.mrf.mxu1  ;;  %v500_v14 = vadd.f32 %v499_v49, %v406_v34  ;;  %v319_v34 = vadd.f32 %v2383_v29, %v2411_v55 }
 0x11a   :  { %2949 = vst [vmem:[#allocation19_spill] sm:$0xff] %v2425_v58 }
 0x11f   :  { %v692_v40 = vpop.f32.mrf.mxu0 }
 0x120   :  { %v693_v19 = vadd.f32 %v692_v40, %v584_v60  ;;  %v607_v60 = vpop.f32.mrf.mxu3  ;;  %v504_v5 = vpop.f32.mrf.mxu2 }
 0x121   :  { %v775_v28 = vpop.f32.mrf.mxu1 }
 0x122   :  { %v2429_v13 = vadd.f32 %v775_v28, %v693_v19  ;;  %v402_v28 = vadd.f32 %v2314_v61, %v279_v50 }
 0x124   :  { %v495_v41 = vadd.f32 %v494_v25, %v402_v28 }
 0x127   :  { %v696_v58 = vpop.f32.mrf.mxu0 }
 0x128   :  { %v697_v51 = vadd.f32 %v696_v58, %v590_v18  ;;  %v602_v58 = vadd.f32 %v601_v31, %v495_v41  ;;  %v2441_v8 = vpop.f32.mrf.mxu3  ;;  %v509_v61 = vpop.f32.mrf.mxu2  ;;  %v608_v18 = vadd.f32 %v607_v60, %v500_v14 }
 0x129   :  { %v779_v20 = vpop.f32.mrf.mxu1 }
 0x12a   :  { %v2434_v45 = vadd.f32 %v779_v20, %v697_v51 }
 0x12f   :  { %v700_v19 = vpop.f32.mrf.mxu0 }
 0x130   :  { %v701_v40 = vadd.f32 %v700_v19, %v596_v11  ;;  %v619_v51 = vpop.f32.mrf.mxu3  ;;  %v514_v0 = vpop.f32.mrf.mxu2 }
 0x131   :  { %v783_v1 = vpop.f32.mrf.mxu1 }
 0x132   :  { %v2438_v27 = vadd.f32 %v783_v1, %v701_v40 }
 0x137   :  { %v704_v23 = vpop.f32.mrf.mxu0 }
 0x138   :  { %v705_v57 = vadd.f32 %v704_v23, %v602_v58  ;;  %v625_v50 = vpop.f32.mrf.mxu3  ;;  %v519_v2 = vpop.f32.mrf.mxu2  ;;  %v327_v58 = vadd.f32 %v2395_v35, %v2403_v43  ;;  %v335_v23 = vadd.f32 %v2305_v36, %v2229_v33  ;;  %v422_v35 = vadd.f32 %v2387_v30, %v319_v34 }
 0x139   :  { %v787_v62 = vpop.f32.mrf.mxu1  ;;  %v295_v36 = vadd.f32 %v2343_v7, %v2233_v37 }
 0x13a   :  { %v2444_v56 = vadd.f32 %v787_v62, %v705_v57  ;;  %v311_v62 = vadd.f32 %v2372_v4, %v2391_v38  ;;  %v426_v14 = vadd.f32 %v2397_v21, %v327_v58  ;;  %v520_v55 = vadd.f32 %v519_v2, %v422_v35 }
 0x13b   :  { %v343_v38 = vadd.f32 %v2324_v63, %v2226_v32  ;;  %v410_v30 = vadd.f32 %v2350_v10, %v295_v36 }
 0x13c   :  { %v418_v29 = vadd.f32 %v2374_v22, %v311_v62 }
 0x13d   :  { %v434_v34 = vadd.f32 %v2337_v52, %v343_v38  ;;  %v505_v22 = vadd.f32 %v504_v5, %v410_v30  ;;  %v247_v52 = vadd.f32 %v2263_v47, %v2248_v44  ;;  %v77_v5 = vpop.permute.xlu2 %76  ;;  %v2951_v30 = vld [vmem:[#allocation7_spill] sm:$0xff] }
 0x13e   :  { %v515_v21 = vadd.f32 %v514_v0, %v418_v29 }
 0x13f   :  { %v708_v17 = vpop.f32.mrf.mxu0  ;;  %v614_v10 = vadd.f32 %v2441_v8, %v505_v22  ;;  %v231_v8 = vadd.f32 %v2244_v12, %v77_v5 }
 0x140   :  { %v709_v25 = vadd.f32 %v708_v17, %v608_v18  ;;  %v631_v28 = vpop.f32.mrf.mxu3  ;;  %v524_v1 = vpop.f32.mrf.mxu2  ;;  %v303_v18 = vadd.f32 %v2359_v15, %v2405_v3  ;;  %v626_v2 = vadd.f32 %v625_v50, %v515_v21 }
 0x141   :  { %v791_v20 = vpop.f32.mrf.mxu1  ;;  %v525_v43 = vadd.f32 %v524_v1, %v426_v14  ;;  %v632_v1 = vadd.f32 %v631_v28, %v520_v55 }
 0x142   :  { %v2446_v53 = vadd.f32 %v791_v20, %v709_v25  ;;  %v430_v25 = vadd.f32 %v2312_v59, %v335_v23  ;;  %v414_v15 = vadd.f32 %v2361_v16, %v303_v18  ;;  %v82_v18 = vpop.permute.xlu1 %81 }
 0x144   :  { %v510_v59 = vadd.f32 %v509_v61, %v414_v15  ;;  %v2950_v15 = vld [vmem:[#allocation9_spill] sm:$0xff] }
 0x146   :  { %v620_v14 = vadd.f32 %v619_v51, %v510_v59 }
 0x147   :  { %v712_v6 = vpop.f32.mrf.mxu0 }
 0x148   :  { %v637_v41 = vpop.f32.mrf.mxu3  ;;  %v529_v57 = vpop.f32.mrf.mxu2 }
 0x149   :  { %v2448_v31 = vpop.f32.mrf.mxu1  ;;  %v530_v4 = vadd.f32 %v529_v57, %v430_v25  ;;  %v638_v3 = vadd.f32 %v637_v41, %v525_v43  ;;  %v239_v43 = vadd.f32 %v2255_v24, %v82_v18  ;;  %v2957_v18 = vld [vmem:[#allocation16_spill] sm:$0xff] }
 0x14f   :  { %v716_v11 = vpop.f32.mrf.mxu0 }
 0x150   :  { %v643_v20 = vpop.f32.mrf.mxu3  ;;  %v534_v37 = vpop.f32.mrf.mxu2  ;;  %v717_v28 = vadd.f32 %v716_v11, %v620_v14  ;;  %v386_v11 = vadd.f32 %v2265_v48, %v247_v52  ;;  %v378_v48 = vadd.f32 %v2246_v42, %v231_v8  ;;  %v829_v14 = vmax.f32 %v2444_v56, 0.0  ;;  %v2960_v8 = vld [vmem:[#allocation12_spill] sm:$0xff] }
 0x151   :  { %v799_v19 = vpop.f32.mrf.mxu1  ;;  %v644_v58 = vadd.f32 %v643_v20, %v530_v4  ;;  %v535_v63 = vadd.f32 %v534_v37, %v434_v34  ;;  %v830_v34 = vmax.f32 %v2446_v53, 0.0 }
 0x152   :  { %v800_v20 = vadd.f32 %v799_v19, %v717_v28  ;;  %v475_v24 = vadd.f32 %v2393_v39, %v386_v11  ;;  %v828_v28 = vmax.f32 %v2438_v27, 0.0  ;;  %v827_v27 = vmax.f32 %v2434_v45, 0.0 }
 0x153   :  { %v2530_v56 = vand.u32 4294901760, %v830_v34  ;;  %v826_v45 = vmax.f32 %v2429_v13, 0.0 }
 0x154   :  { %v832_v19 = vmax.f32 %v800_v20, 0.0 }
 0x156   :  { %v2503_v42 = vand.u32 4294901760, %v832_v19 }
 0x157   :  { %v720_v49 = vpop.f32.mrf.mxu0 }
 0x158   :  { %v721_v16 = vadd.f32 %v720_v49, %v626_v2  ;;  %v649_v61 = vpop.f32.mrf.mxu3  ;;  %v2954_v2 = vld [vmem:[#allocation10_spill] sm:$0xff] }
 0x159   :  { %v803_v40 = vpop.f32.mrf.mxu1  ;;  %v650_v50 = vadd.f32 %v649_v61, %v535_v63 }
 0x15a   :  { %v804_v35 = vadd.f32 %v803_v40, %v721_v16  ;;  %v382_v40 = vadd.f32 %v2257_v26, %v239_v43  ;;  %v2544_v43 = vand.u32 4294901760, %v829_v14 }
 0x15c   :  { %v833_v47 = vmax.f32 %v804_v35, 0.0  ;;  %v470_v21 = vadd.f32 %v2950_v15, %v382_v40  ;;  %v2959_v35 = vld [vmem:[#allocation19_spill] sm:$0xff]  ;;  %v838_v15 = vld [vmem:[%s2929_s3] sm:$0xff] }
 0x15e   :  { %v2493_v59 = vand.u32 4294901760, %v833_v47 }
 0x15f   :  { %v724_v60 = vpop.f32.mrf.mxu0 }
 0x160   :  { %v725_v57 = vadd.f32 %v724_v60, %v632_v1  ;;  %v713_v60 = vadd.f32 %v712_v6, %v614_v10  ;;  %v465_v1 = vadd.f32 %v2951_v30, %v378_v48  ;;  %v2521_v63 = vsub.f32 %v833_v47, %v2493_v59 }
 0x161   :  { %v807_v54 = vpop.f32.mrf.mxu1  ;;  %v2558_v47 = vand.u32 4294901760, %v828_v28 }
 0x162   :  { %v796_v44 = vadd.f32 %v2448_v31, %v713_v60  ;;  %v460_v31 = vadd.f32 %v2348_v9, %v2260_v46 }
 0x167   :  { %v728_v17 = vpop.f32.mrf.mxu0 }
 0x168   :  { %v729_v23 = vadd.f32 %v728_v17, %v638_v3  ;;  %v808_v17 = vadd.f32 %v807_v54, %v725_v57  ;;  %v831_v3 = vmax.f32 %v796_v44, 0.0  ;;  %v572_v57 = vadd.f32 %v2954_v2, %v470_v21 }
 0x169   :  { %v811_v33 = vpop.f32.mrf.mxu1  ;;  %v2578_v21 = vsub.f32 %v829_v14, %v2544_v43 }
 0x16a   :  { %v812_v0 = vadd.f32 %v811_v33, %v729_v23  ;;  %v834_v33 = vmax.f32 %v808_v17, 0.0  ;;  %v685_v10 = vadd.f32 %v2957_v18, %v572_v57  ;;  %v2533_v17 = vsub.f32 %v832_v19, %v2503_v42 }
 0x16c   :  { %v835_v51 = vmax.f32 %v812_v0, 0.0  ;;  %v2484_v4 = vand.u32 4294901760, %v834_v33  ;;  %v1023_v19 = vand.u32 4294901760, %v2533_v17 }
 0x16e   :  { %v2480_v55 = vand.u32 4294901760, %v835_v51  ;;  %v2506_v46 = vsub.f32 %v834_v33, %v2484_v4  ;;  %v1024_v2 = vsub.f32 %v2533_v17, %v1023_v19 }
 0x16f   :  { %v732_v7 = vpop.f32.mrf.mxu0 }
 0x170   :  { %v733_v62 = vadd.f32 %v732_v7, %v644_v58  ;;  %v2496_v26 = vsub.f32 %v835_v51, %v2480_v55  ;;  %v2952_v58 = vld [vmem:[#allocation11_spill] sm:$0xff]  ;;  %v2953_v7 = vld [vmem:[#allocation6_spill] sm:$0xff]  ;;  %v1011_v5 = vand.u32 4294901760, %v2506_v46 }
 0x171   :  { %v815_v32 = vpop.f32.mrf.mxu1  ;;  %v578_v23 = vadd.f32 %v2952_v58, %v475_v24  ;;  %v560_v22 = vadd.f32 %v2953_v7, %v460_v31  ;;  %v2571_v31 = vand.u32 4294901760, %v827_v27  ;;  %v2963_v58 = vld [vmem:[#allocation13_spill] sm:$0xff]  ;;  %v2590_v7 = vsub.f32 %v828_v28, %v2558_v47 }
 0x172   :  { %v816_v41 = vadd.f32 %v815_v32, %v733_v62  ;;  %v2955_v62 = vld [vmem:[#allocation18_spill] sm:$0xff]  ;;  %v2518_v32 = vand.u32 4294901760, %v831_v3  ;;  %v1005_v0 = vand.u32 4294901760, %v2496_v26  ;;  %v1012_v24 = vsub.f32 %v2506_v46, %v1011_v5 }
 0x173   :  { %v689_v53 = vadd.f32 %v2955_v62, %v578_v23  ;;  %v677_v11 = vadd.f32 %v2960_v8, %v560_v22  ;;  %v2596_v62 = vand.u32 4294901760, %v838_v15 }
 0x174   :  { %v836_v25 = vmax.f32 %v816_v41, 0.0  ;;  %v2956_v41 = vld [vmem:[#allocation8_spill] sm:$0xff]  ;;  %v1006_v33 = vsub.f32 %v2496_v26, %v1005_v0  ;;  %v1013_v22 = vand.u32 4294901760, %v1012_v24 }
 0x175   :  { %v566_v61 = vadd.f32 %v2956_v41, %v465_v1  ;;  %v2541_v51 = vadd.f32 %v2959_v35, %v689_v53  ;;  %v2584_v23 = vadd.f32 %v2963_v58, %v677_v11  ;;  %v839_v35 = vld [vmem:[%s2929_s3 + $0x8] sm:$0xff] }
 0x176   :  { %v2475_v36 = vand.u32 4294901760, %v836_v25 }
 0x177   :  { %v736_v49 = vpop.f32.mrf.mxu0  ;;  %v825_v13 = vmax.f32 %v2541_v51, 0.0  ;;  %v822_v18 = vmax.f32 %v2584_v23, 0.0  ;;  %v840_v23 = vld [vmem:[%s2929_s3 + $0x10] sm:$0xff] }
 0x178   :  { %v737_v29 = vadd.f32 %v736_v49, %v650_v50  ;;  %v2487_v38 = vsub.f32 %v836_v25, %v2475_v36  ;;  %v2958_v50 = vld [vmem:[#allocation14_spill] sm:$0xff]  ;;  %v2548_v49 = vsub.f32 %v831_v3, %v2518_v32  ;;  %v1007_v3 = vand.u32 4294901760, %v1006_v33 }
 0x179   :  { %v819_v54 = vpop.f32.mrf.mxu1  ;;  %v681_v60 = vadd.f32 %v2958_v50, %v566_v61  ;;  %v2599_v14 = vand.u32 4294901760, %v825_v13  ;;  %v1041_v61 = vand.u32 4294901760, %v2578_v21  ;;  %v2619_v50 = vsub.f32 %v838_v15, %v2596_v62 }
 0x17a   :  { %v820_v6 = vadd.f32 %v819_v54, %v737_v29  ;;  %v999_v37 = vand.u32 4294901760, %v2487_v38  ;;  %v1017_v29 = vand.u32 4294901760, %v2521_v63  ;;  %v2961_v54 = vld [vmem:[#allocation17_spill] sm:$0xff]  ;;  %v1029_v1 = vand.u32 4294901760, %v2548_v49 }
 0x17b   :  { %v2555_v44 = vadd.f32 %v2961_v54, %v685_v10  ;;  %v2628_v51 = vsub.f32 %v825_v13, %v2599_v14 }
 0x17c   :  { %v837_v12 = vmax.f32 %v820_v6, 0.0  ;;  %v1000_v52 = vsub.f32 %v2487_v38, %v999_v37  ;;  %v2562_v6 = vsub.f32 %v830_v34, %v2530_v56  ;;  %v1018_v30 = vsub.f32 %v2521_v63, %v1017_v29 }
 0x17d   :  { %v824_v34 = vmax.f32 %v2555_v44, 0.0  ;;  %v1030_v41 = vsub.f32 %v2548_v49, %v1029_v1 }
 0x17e   :  { %v2498_v39 = vand.u32 4294901760, %v837_v12  ;;  %v1001_v40 = vand.u32 4294901760, %v1000_v52  ;;  %v1035_v57 = vand.u32 4294901760, %v2562_v6 }
 0x17f   :  { %v2609_v10 = vand.u32 4294901760, %v824_v34 }
 0x180   :  { %v2509_v9 = vsub.f32 %v837_v12, %v2498_v39  ;;  %895 = vmatpush.msra.mxu2 %v2498_v39  ;;  %1388 = vmatpush.msra.mxu1 %v2498_v39  ;;  %v2962_v12 = vld [vmem:[#allocation15_spill] sm:$0xff]  ;;  %v1036_v52 = vsub.f32 %v2562_v6, %v1035_v57 }
 0x181   :  { %v2568_v48 = vadd.f32 %v2962_v12, %v681_v60  ;;  %v2636_v8 = vsub.f32 %v824_v34, %v2609_v10 }
 0x182   :  { %v993_v16 = vand.u32 4294901760, %v2509_v9  ;;  %897 = vmatpush.msra.mxu2 %v2475_v36  ;;  %1390 = vmatpush.msra.mxu1 %v2475_v36  ;;  %v1037_v54 = vand.u32 4294901760, %v1036_v52 }
 0x183   :  { %v823_v53 = vmax.f32 %v2568_v48, 0.0  ;;  %v1065_v48 = vand.u32 4294901760, %v2628_v51  ;;  %v1071_v15 = vand.u32 4294901760, %v2636_v8 }
 0x184   :  { %v994_v25 = vsub.f32 %v2509_v9, %v993_v16  ;;  %899 = vmatpush.msra.mxu2 %v2480_v55  ;;  %1293 = vmatpush.msra.mxu0 %v993_v16  ;;  %v2603_v16 = vsub.f32 %v827_v27, %v2571_v31  ;;  %v1031_v27 = vand.u32 4294901760, %v1030_v41 }
 0x185   :  { %1392 = vmatpush.msra.mxu1 %v2480_v55  ;;  %v2621_v60 = vand.u32 4294901760, %v823_v53 }
 0x186   :  { %901 = vmatpush.msra.mxu2 %v2484_v4  ;;  %1297 = vmatpush.msra.mxu0 %v999_v37  ;;  %v995_v20 = vand.u32 4294901760, %v994_v25  ;;  %v2587_v37 = vand.u32 4294901760, %v826_v45  ;;  %v1025_v25 = vand.u32 4294901760, %v1024_v2  ;;  %v1053_v33 = vand.u32 4294901760, %v2603_v16 }
 0x187   :  { %1394 = vmatpush.msra.mxu1 %v2484_v4  ;;  %v2647_v24 = vsub.f32 %v823_v53, %v2621_v60 }
 0x188   :  { %903 = vmatpush.msra.mxu2 %v2493_v59  ;;  %996 = vmatpush.msra.mxu3 %v995_v20  ;;  %v2612_v28 = vsub.f32 %v826_v45, %v2587_v37  ;;  %v1042_v20 = vsub.f32 %v2578_v21, %v1041_v61  ;;  %v928_v45 = vand.u32 4294901760, %v2619_v50  ;;  %v1054_v12 = vsub.f32 %v2603_v16, %v1053_v33 }
 0x189   :  { %1301 = vmatpush.msra.mxu0 %v1005_v0  ;;  %1396 = vmatpush.msra.mxu1 %v2493_v59  ;;  %v1019_v0 = vand.u32 4294901760, %v1018_v30  ;;  %v1077_v2 = vand.u32 4294901760, %v2647_v24 }
 0x18a   :  { %905 = vmatpush.msra.mxu2 %v2503_v42  ;;  %1002 = vmatpush.msra.mxu3 %v1001_v40  ;;  %v1059_v11 = vand.u32 4294901760, %v2612_v28  ;;  %v2643_v40 = vand.u32 4294901760, %v839_v35  ;;  %v1055_v34 = vand.u32 4294901760, %v1054_v12 }
 0x18b   :  { %1305 = vmatpush.msra.mxu0 %v1011_v5  ;;  %1398 = vmatpush.msra.mxu1 %v2503_v42  ;;  %v1047_v5 = vand.u32 4294901760, %v2590_v7  ;;  %v1078_v52 = vsub.f32 %v2647_v24, %v1077_v2 }
 0x18c   :  { %907 = vmatpush.msra.mxu2 %v2518_v32  ;;  %1008 = vmatpush.msra.mxu3 %v1007_v3  ;;  %v1060_v30 = vsub.f32 %v2612_v28, %v1059_v11  ;;  %v2663_v58 = vsub.f32 %v839_v35, %v2643_v40 }
 0x18d   :  { %1309 = vmatpush.msra.mxu0 %v1017_v29  ;;  %1400 = vmatpush.msra.mxu1 %v2518_v32  ;;  %v2633_v29 = vand.u32 4294901760, %v822_v18  ;;  %v1048_v44 = vsub.f32 %v2590_v7, %v1047_v5 }
 0x18e   :  { %909 = vmatpush.msra.mxu2 %v2530_v56  ;;  %1014 = vmatpush.msra.mxu3 %v1013_v22  ;;  %v1066_v22 = vsub.f32 %v2628_v51, %v1065_v48 }
 0x18f   :  { %1313 = vmatpush.msra.mxu0 %v1023_v19  ;;  %1402 = vmatpush.msra.mxu1 %v2530_v56  ;;  %v1043_v19 = vand.u32 4294901760, %v1042_v20  ;;  %v2653_v13 = vsub.f32 %v822_v18, %v2633_v29  ;;  %v1049_v3 = vand.u32 4294901760, %v1048_v44  ;;  %v2677_v18 = vand.u32 4294901760, %v840_v23 }
 0x190   :  { %911 = vmatpush.msra.mxu2 %v2544_v43  ;;  %1020 = vmatpush.msra.mxu3 %v1019_v0  ;;  %v1061_v0 = vand.u32 4294901760, %v1060_v30 }
 0x191   :  { %1317 = vmatpush.msra.mxu0 %v1029_v1  ;;  %1404 = vmatpush.msra.mxu1 %v2544_v43  ;;  %v929_v1 = vsub.f32 %v2619_v50, %v928_v45  ;;  %v1083_v53 = vand.u32 4294901760, %v2653_v13  ;;  %v2688_v20 = vsub.f32 %v840_v23, %v2677_v18 }
 0x192   :  { %913 = vmatpush.msra.mxu2 %v2558_v47  ;;  %1026 = vmatpush.msra.mxu3 %v1025_v25  ;;  %v1067_v25 = vand.u32 4294901760, %v1066_v22 }
 0x193   :  { %1321 = vmatpush.msra.mxu0 %v1035_v57  ;;  %1406 = vmatpush.msra.mxu1 %v2558_v47  ;;  %v1072_v57 = vsub.f32 %v2636_v8, %v1071_v15  ;;  %v930_v41 = vand.u32 4294901760, %v929_v1  ;;  %v1084_v35 = vsub.f32 %v2653_v13, %v1083_v53  ;;  %v882_v1 = vpop.permute.xlu0 %881 }
 0x194   :  { %915 = vmatpush.msra.mxu2 %v2571_v31  ;;  %1032 = vmatpush.msra.mxu3 %v1031_v27 }
 0x195   :  { %1325 = vmatpush.msra.mxu0 %v1041_v61  ;;  %1408 = vmatpush.msra.mxu1 %v2571_v31  ;;  %v936_v61 = vand.u32 4294901760, %v2663_v58 }
 0x196   :  { %917 = vmatpush.msra.mxu2 %v2587_v37  ;;  %1038 = vmatpush.msra.mxu3 %v1037_v54  ;;  %v1085_v54 = vand.u32 4294901760, %v1084_v35 }
 0x197   :  { %1329 = vmatpush.msra.mxu0 %v1047_v5  ;;  %1410 = vmatpush.msra.mxu1 %v2587_v37  ;;  %v1073_v5 = vand.u32 4294901760, %v1072_v57  ;;  %v937_v27 = vsub.f32 %v2663_v58, %v936_v61 }
 0x198   :  { %919 = vmatpush.msra.mxu2 %v2599_v14  ;;  %1044 = vmatpush.msra.mxu3 %v1043_v19  ;;  %v944_v19 = vand.u32 4294901760, %v2688_v20 }
 0x199   :  { %1333 = vmatpush.msra.mxu0 %v1053_v33  ;;  %1412 = vmatpush.msra.mxu1 %v2599_v14  ;;  %v841_v33 = vld [vmem:[%s2929_s3 + $0x18] sm:$0xff]  ;;  %v938_v44 = vand.u32 4294901760, %v937_v27 }
 0x19a   :  { %921 = vmatpush.msra.mxu2 %v2609_v10  ;;  %1050 = vmatpush.msra.mxu3 %v1049_v3  ;;  %v950_v12 = vand.u32 4294901760, %v841_v33 }
 0x19b   :  { %1337 = vmatpush.msra.mxu0 %v1059_v11  ;;  %1414 = vmatpush.msra.mxu1 %v2609_v10  ;;  %v1079_v11 = vand.u32 4294901760, %v1078_v52  ;;  %v867_v57 = vpop.permute.xlu0 %866 }
 0x19c   :  { %923 = vmatpush.msra.mxu2 %v2621_v60  ;;  %1056 = vmatpush.msra.mxu3 %v1055_v34 }
 0x19d   :  { %1341 = vmatpush.msra.mxu0 %v1065_v48  ;;  %1416 = vmatpush.msra.mxu1 %v2621_v60 }
 0x19e   :  { %925 = vmatpush.msra.mxu2 %v2633_v29  ;;  %1062 = vmatpush.msra.mxu3 %v1061_v0 }
 0x19f   :  { %1345 = vmatpush.msra.mxu0 %v1071_v15  ;;  %1418 = vmatpush.msra.mxu1 %v2633_v29 }
 0x1a0   :  { %931 = vmatmul.f32.vlgmr.msra.gmra.mxu2 %v930_v41  ;;  %1068 = vmatpush.msra.mxu3 %v1067_v25 }
 0x1a1   :  { %1122 = vmatpush.msrb.mxu2 %v2509_v9  ;;  %1349 = vmatpush.msra.mxu0 %v1077_v2  ;;  %v2705_v9 = vsub.f32 %v841_v33, %v950_v12 }
 0x1a2   :  { %1074 = vmatpush.msra.mxu3 %v1073_v5  ;;  %1420 = vmatmul.f32.vlgmr.msra.gmra.mxu1 %v2596_v62 }
 0x1a3   :  { %1125 = vmatpush.msrb.mxu2 %v2487_v38  ;;  %1353 = vmatpush.msra.mxu0 %v1083_v53  ;;  %v945_v38 = vsub.f32 %v2688_v20, %v944_v19 }
 0x1a4   :  { %1080 = vmatpush.msra.mxu3 %v1079_v11  ;;  %1355 = vmatmul.f32.vlgmr.msra.gmra.mxu0 %v2596_v62 }
 0x1a5   :  { %1128 = vmatpush.msrb.mxu2 %v2496_v26  ;;  %v842_v26 = vld [vmem:[%s2929_s3 + $0x20] sm:$0xff] }
 0x1a6   :  { %1086 = vmatpush.msra.mxu3 %v1085_v54 }
 0x1a7   :  { %1131 = vmatpush.msrb.mxu2 %v2506_v46  ;;  %1088 = vmatmul.f32.vlgmr.msra.gmra.mxu3 %v2596_v62  ;;  %v952_v46 = vand.u32 4294901760, %v2705_v9  ;;  %v958_v62 = vand.u32 4294901760, %v842_v26 }
 0x1a8   :  { %939 = vmatmul.f32.gmra.mxu2 %v938_v44  ;;  %1210 = vmatpush.msrb.mxu3 %v2498_v39  ;;  %v946_v39 = vand.u32 4294901760, %v945_v38 }
 0x1a9   :  { %1134 = vmatpush.msrb.mxu2 %v2521_v63  ;;  %v843_v63 = vld [vmem:[%s2929_s3 + $0x28] sm:$0xff] }
 0x1aa   :  { %1212 = vmatpush.msrb.mxu3 %v2475_v36  ;;  %1424 = vmatmul.f32.gmra.mxu1 %v2643_v40  ;;  %v953_v36 = vsub.f32 %v2705_v9, %v952_v46 }
 0x1ab   :  { %1137 = vmatpush.msrb.mxu2 %v2533_v17  ;;  %v966_v17 = vand.u32 4294901760, %v843_v63 }
 0x1ac   :  { %1214 = vmatpush.msrb.mxu3 %v2480_v55  ;;  %1359 = vmatmul.f32.gmra.mxu0 %v2643_v40  ;;  %v2725_v55 = vsub.f32 %v842_v26, %v958_v62 }
 0x1ad   :  { %1140 = vmatpush.msrb.mxu2 %v2548_v49  ;;  %v844_v49 = vld [vmem:[%s2929_s3 + $0x30] sm:$0xff] }
 0x1ae   :  { %1216 = vmatpush.msrb.mxu3 %v2484_v4  ;;  %v954_v4 = vand.u32 4294901760, %v953_v36 }
 0x1af   :  { %1143 = vmatpush.msrb.mxu2 %v2562_v6  ;;  %1092 = vmatmul.f32.gmra.mxu3 %v2643_v40  ;;  %v974_v6 = vand.u32 4294901760, %v844_v49 }
 0x1b0   :  { %947 = vmatmul.f32.gmra.mxu2 %v946_v39  ;;  %1218 = vmatpush.msrb.mxu3 %v2493_v59  ;;  %v960_v59 = vand.u32 4294901760, %v2725_v55 }
 0x1b1   :  { %1146 = vmatpush.msrb.mxu2 %v2578_v21  ;;  %v975_v21 = vsub.f32 %v844_v49, %v974_v6 }
 0x1b2   :  { %1220 = vmatpush.msrb.mxu3 %v2503_v42  ;;  %1428 = vmatmul.f32.gmra.mxu1 %v2677_v18  ;;  %v961_v42 = vsub.f32 %v2725_v55, %v960_v59 }
 0x1b3   :  { %1149 = vmatpush.msrb.mxu2 %v2590_v7 }
 0x1b4   :  { %1222 = vmatpush.msrb.mxu3 %v2518_v32  ;;  %1363 = vmatmul.f32.gmra.mxu0 %v2677_v18  ;;  %v967_v32 = vsub.f32 %v843_v63, %v966_v17 }
 0x1b5   :  { %1152 = vmatpush.msrb.mxu2 %v2603_v16  ;;  %v976_v16 = vand.u32 4294901760, %v975_v21 }
 0x1b6   :  { %1224 = vmatpush.msrb.mxu3 %v2530_v56  ;;  %v962_v56 = vand.u32 4294901760, %v961_v42 }
 0x1b7   :  { %1155 = vmatpush.msrb.mxu2 %v2612_v28  ;;  %1096 = vmatmul.f32.gmra.mxu3 %v2677_v18 }
 0x1b8   :  { %955 = vmatmul.f32.gmra.mxu2 %v954_v4  ;;  %1226 = vmatpush.msrb.mxu3 %v2544_v43  ;;  %v968_v43 = vand.u32 4294901760, %v967_v32 }
 0x1b9   :  { %1158 = vmatpush.msrb.mxu2 %v2628_v51 }
 0x1ba   :  { %1228 = vmatpush.msrb.mxu3 %v2558_v47  ;;  %1432 = vmatmul.f32.gmra.mxu1 %v950_v12  ;;  %v969_v47 = vsub.f32 %v967_v32, %v968_v43 }
 0x1bb   :  { %1161 = vmatpush.msrb.mxu2 %v2636_v8 }
 0x1bc   :  { %1230 = vmatpush.msrb.mxu3 %v2571_v31  ;;  %1367 = vmatmul.f32.gmra.mxu0 %v950_v12  ;;  %v845_v31 = vld [vmem:[%s2929_s3 + $0x38] sm:$0xff]  ;;  %v970_v7 = vand.u32 4294901760, %v969_v47 }
 0x1bd   :  { %1164 = vmatpush.msrb.mxu2 %v2647_v24 }
 0x1be   :  { %1232 = vmatpush.msrb.mxu3 %v2587_v37  ;;  %v982_v37 = vand.u32 4294901760, %v845_v31 }
 0x1bf   :  { %1167 = vmatpush.msrb.mxu2 %v2653_v13  ;;  %1100 = vmatmul.f32.gmra.mxu3 %v950_v12 }
 0x1c0   :  { %963 = vmatmul.f32.gmra.mxu2 %v962_v56  ;;  %1234 = vmatpush.msrb.mxu3 %v2599_v14  ;;  %v977_v14 = vsub.f32 %v975_v21, %v976_v16  ;;  %v983_v28 = vsub.f32 %v845_v31, %v982_v37 }
 0x1c2   :  { %1236 = vmatpush.msrb.mxu3 %v2609_v10  ;;  %1436 = vmatmul.f32.gmra.mxu1 %v958_v62  ;;  %v978_v51 = vand.u32 4294901760, %v977_v14  ;;  %v984_v8 = vand.u32 4294901760, %v983_v28 }
 0x1c4   :  { %1238 = vmatpush.msrb.mxu3 %v2621_v60  ;;  %1371 = vmatmul.f32.gmra.mxu0 %v958_v62  ;;  %v985_v10 = vsub.f32 %v983_v28, %v984_v8  ;;  %v2777_v60 = vpop.permute.xlu1 %891 }
 0x1c6   :  { %1240 = vmatpush.msrb.mxu3 %v2633_v29  ;;  %v986_v40 = vand.u32 4294901760, %v985_v10 }
 0x1c7   :  { %1104 = vmatmul.f32.gmra.mxu3 %v958_v62 }
 0x1c8   :  { %971 = vmatmul.f32.gmra.mxu2 %v970_v7 }
 0x1ca   :  { %1440 = vmatmul.f32.gmra.mxu1 %v966_v17 }
 0x1cc   :  { %1375 = vmatmul.f32.gmra.mxu0 %v966_v17  ;;  %v877_v24 = vpop.permute.xlu1 %876 }
 0x1cf   :  { %1108 = vmatmul.f32.gmra.mxu3 %v966_v17 }
 0x1d0   :  { %979 = vmatmul.f32.gmra.mxu2 %v978_v51 }
 0x1d2   :  { %1444 = vmatmul.f32.gmra.mxu1 %v974_v6 }
 0x1d4   :  { %1379 = vmatmul.f32.gmra.mxu0 %v974_v6 }
 0x1d7   :  { %1112 = vmatmul.f32.gmra.mxu3 %v974_v6 }
 0x1d8   :  { %987 = vmatmul.f32.gmra.mxu2 %v986_v40 }
 0x1da   :  { %1448 = vmatmul.f32.gmra.mxu1 %v982_v37 }
 0x1dc   :  { %1383 = vmatmul.f32.gmra.mxu0 %v982_v37 }
 0x1df   :  { %1116 = vmatmul.f32.gmra.mxu3 %v982_v37 }
 0x1e0   :  { %1170 = vmatmul.f32.vlgmr.msrb.gmra.mxu2 %v2619_v50  ;;  %v887_v50 = vpop.permute.xlu2 %886 }
 0x1e7   :  { %1244 = vmatmul.f32.vlgmr.msrb.gmra.mxu3 %v928_v45 }
 0x1e8   :  { %1175 = vmatmul.f32.gmra.mxu2 %v2663_v58  ;;  %v872_v29 = vpop.permute.xlu2 %871  ;;  %v862_v58 = vpop.permute.xlu1 %861 }
 0x1ef   :  { %1250 = vmatmul.f32.gmra.mxu3 %v936_v61 }
 0x1f0   :  { %1180 = vmatmul.f32.gmra.mxu2 %v2688_v20  ;;  %v857_v48 = vpop.permute.xlu2 %856 }
 0x1f7   :  { %1256 = vmatmul.f32.gmra.mxu3 %v944_v19 }
 0x1f8   :  { %1185 = vmatmul.f32.gmra.mxu2 %v2705_v9 }
 0x1ff   :  { %1262 = vmatmul.f32.gmra.mxu3 %v952_v46 }
 0x200   :  { %1190 = vmatmul.f32.gmra.mxu2 %v2725_v55 }
 0x207   :  { %1268 = vmatmul.f32.gmra.mxu3 %v960_v59 }
 0x208   :  { %1195 = vmatmul.f32.gmra.mxu2 %v967_v32 }
 0x20f   :  { %1274 = vmatmul.f32.gmra.mxu3 %v968_v43 }
 0x210   :  { %1200 = vmatmul.f32.gmra.mxu2 %v975_v21 }
 0x217   :  { %1280 = vmatmul.f32.gmra.mxu3 %v976_v16 }
 0x218   :  { %1205 = vmatmul.f32.gmra.mxu2 %v983_v28 }
 0x21f   :  { %1286 = vmatmul.f32.gmra.mxu3 %v984_v8  ;;  %v1421_v46 = vpop.f32.mrf.mxu1 }
 0x221   :  { %v1356_v39 = vpop.f32.mrf.mxu0 }
 0x223   :  { %v932_v45 = vpop.f32.mrf.mxu2 }
 0x224   :  { %v933_v13 = vadd.f32 %v932_v45, %v857_v48 }
 0x227   :  { %v2781_v4 = vpop.f32.mrf.mxu1 }
 0x229   :  { %v1360_v63 = vpop.f32.mrf.mxu0 }
 0x22a   :  { %v1089_v15 = vpop.f32.mrf.mxu3 }
 0x22b   :  { %v940_v3 = vpop.f32.mrf.mxu2  ;;  %v1090_v30 = vadd.f32 %v1089_v15, %v933_v13 }
 0x22c   :  { %v941_v23 = vadd.f32 %v940_v3, %v862_v58 }
 0x22f   :  { %v1429_v6 = vpop.f32.mrf.mxu1 }
 0x231   :  { %v1364_v56 = vpop.f32.mrf.mxu0 }
 0x232   :  { %v1093_v34 = vpop.f32.mrf.mxu3 }
 0x233   :  { %v948_v22 = vpop.f32.mrf.mxu2  ;;  %v2779_v2 = vadd.f32 %v1093_v34, %v941_v23 }
 0x234   :  { %v949_v53 = vadd.f32 %v948_v22, %v867_v57 }
 0x237   :  { %v1433_v16 = vpop.f32.mrf.mxu1 }
 0x239   :  { %v1368_v31 = vpop.f32.mrf.mxu0 }
 0x23a   :  { %v1097_v0 = vpop.f32.mrf.mxu3 }
 0x23b   :  { %v956_v41 = vpop.f32.mrf.mxu2  ;;  %v1098_v61 = vadd.f32 %v1097_v0, %v949_v53 }
 0x23c   :  { %v957_v18 = vadd.f32 %v956_v41, %v872_v29 }
 0x23f   :  { %v1437_v51 = vpop.f32.mrf.mxu1 }
 0x241   :  { %v1372_v28 = vpop.f32.mrf.mxu0 }
 0x242   :  { %v1101_v25 = vpop.f32.mrf.mxu3 }
 0x243   :  { %v964_v52 = vpop.f32.mrf.mxu2  ;;  %v1102_v5 = vadd.f32 %v1101_v25, %v957_v18 }
 0x244   :  { %v965_v35 = vadd.f32 %v964_v52, %v877_v24 }
 0x249   :  { %v1376_v40 = vpop.f32.mrf.mxu0 }
 0x24a   :  { %v1105_v27 = vpop.f32.mrf.mxu3 }
 0x24b   :  { %v972_v20 = vpop.f32.mrf.mxu2  ;;  %v1106_v33 = vadd.f32 %v1105_v27, %v965_v35 }
 0x24c   :  { %v973_v11 = vadd.f32 %v972_v20, %v882_v1 }
 0x251   :  { %v1380_v3 = vpop.f32.mrf.mxu0 }
 0x252   :  { %v1109_v54 = vpop.f32.mrf.mxu3 }
 0x253   :  { %v980_v44 = vpop.f32.mrf.mxu2  ;;  %v1110_v19 = vadd.f32 %v1109_v54, %v973_v11 }
 0x254   :  { %v981_v12 = vadd.f32 %v980_v44, %v887_v50  ;;  %v1441_v50 = vpop.f32.mrf.mxu1 }
 0x25a   :  { %v1113_v38 = vpop.f32.mrf.mxu3 }
 0x25b   :  { %v988_v9 = vpop.f32.mrf.mxu2  ;;  %v1114_v26 = vadd.f32 %v1113_v38, %v981_v12 }
 0x25c   :  { %v1445_v34 = vpop.f32.mrf.mxu1  ;;  %v989_v25 = vadd.f32 %v988_v9, %v2777_v60  ;;  %v1460_v60 = vld [vmem:[%s2931_s5] sm:$0xff] }
 0x262   :  { %v1117_v62 = vpop.f32.mrf.mxu3 }
 0x263   :  { %v1171_v36 = vpop.f32.mrf.mxu2  ;;  %v1118_v20 = vadd.f32 %v1117_v62, %v989_v25 }
 0x264   :  { %v1172_v55 = vadd.f32 %v1171_v36, %v1090_v30  ;;  %v1449_v36 = vpop.f32.mrf.mxu1 }
 0x26a   :  { %v1245_v59 = vpop.f32.mrf.mxu3 }
 0x26b   :  { %v1176_v17 = vpop.f32.mrf.mxu2  ;;  %v1246_v42 = vadd.f32 %v1245_v59, %v1172_v55 }
 0x26c   :  { %v1177_v0 = vadd.f32 %v1176_v17, %v2779_v2  ;;  %v1490_v17 = vsel %vm1488_vm1, %v1460_v60, 0 }
 0x26d   :  { %v1357_v32 = vadd.f32 %v1356_v39, %v1246_v42 }
 0x26f   :  { %v2783_v49 = vadd.f32 %v1421_v46, %v1357_v32 }
 0x272   :  { %v1251_v43 = vpop.f32.mrf.mxu3 }
 0x273   :  { %v1181_v47 = vpop.f32.mrf.mxu2  ;;  %v1252_v35 = vadd.f32 %v1251_v43, %v1177_v0  ;;  %v1462_v0 = vld [vmem:[%s2931_s5 + $0x10] sm:$0xff] }
 0x274   :  { %v1182_v58 = vadd.f32 %v1181_v47, %v1098_v61 }
 0x275   :  { %v1361_v12 = vadd.f32 %v1360_v63, %v1252_v35 }
 0x277   :  { %v1426_v63 = vadd.f32 %v2781_v4, %v1361_v12 }
 0x27a   :  { %v1257_v21 = vpop.f32.mrf.mxu3 }
 0x27b   :  { %v1186_v7 = vpop.f32.mrf.mxu2  ;;  %v1258_v41 = vadd.f32 %v1257_v21, %v1182_v58 }
 0x27c   :  { %v1187_v30 = vadd.f32 %v1186_v7, %v1102_v5  ;;  %v1453_v7 = vmax.f32 %v1426_v63, 0.0 }
 0x27d   :  { %v1365_v54 = vadd.f32 %v1364_v56, %v1258_v41 }
 0x27f   :  { %v1430_v9 = vadd.f32 %v1429_v6, %v1365_v54 }
 0x281   :  { %v1454_v43 = vmax.f32 %v1430_v9, 0.0 }
 0x282   :  { %v1263_v37 = vpop.f32.mrf.mxu3 }
 0x283   :  { %v1191_v14 = vpop.f32.mrf.mxu2  ;;  %v1264_v22 = vadd.f32 %v1263_v37, %v1187_v30 }
 0x284   :  { %v1192_v48 = vadd.f32 %v1191_v14, %v1106_v33  ;;  %v1461_v14 = vld [vmem:[%s2931_s5 + $0x8] sm:$0xff] }
 0x285   :  { %v1369_v33 = vadd.f32 %v1368_v31, %v1264_v22  ;;  %v2801_v31 = vand.u32 4294901760, %v1490_v17 }
 0x287   :  { %v1434_v39 = vadd.f32 %v1433_v16, %v1369_v33 }
 0x289   :  { %v1455_v42 = vmax.f32 %v1434_v39, 0.0 }
 0x28a   :  { %v1269_v8 = vpop.f32.mrf.mxu3 }
 0x28b   :  { %v1196_v10 = vpop.f32.mrf.mxu2  ;;  %v1270_v15 = vadd.f32 %v1269_v8, %v1192_v48  ;;  %v2803_v16 = vand.u32 4294901760, %v1455_v42 }
 0x28c   :  { %v1197_v24 = vadd.f32 %v1196_v10, %v1110_v19 }
 0x28d   :  { %v1373_v18 = vadd.f32 %v1372_v28, %v1270_v15  ;;  %v1452_v28 = vmax.f32 %v2783_v49, 0.0  ;;  %v2829_v49 = vand.u32 4294901760, %v1453_v7 }
 0x28f   :  { %v1438_v61 = vadd.f32 %v1437_v51, %v1373_v18  ;;  %v2814_v51 = vand.u32 4294901760, %v1454_v43 }
 0x291   :  { %v1456_v62 = vmax.f32 %v1438_v61, 0.0  ;;  %v2841_v15 = vsub.f32 %v1454_v43, %v2814_v51 }
 0x292   :  { %v1275_v29 = vpop.f32.mrf.mxu3 }
 0x293   :  { %v1201_v45 = vpop.f32.mrf.mxu2  ;;  %v1276_v13 = vadd.f32 %v1275_v29, %v1197_v24  ;;  %v2796_v47 = vand.u32 4294901760, %v1456_v62  ;;  %v1493_v29 = vsel %vm1488_vm1, %v1461_v14, 0  ;;  %v1598_v18 = vand.u32 4294901760, %v2841_v15 }
 0x294   :  { %v1202_v1 = vadd.f32 %v1201_v45, %v1114_v26  ;;  %v1384_v26 = vpop.f32.mrf.mxu0  ;;  %v2832_v45 = vsub.f32 %v1455_v42, %v2803_v16 }
 0x295   :  { %v1377_v57 = vadd.f32 %v1376_v40, %v1276_v13  ;;  %v2817_v8 = vsub.f32 %v1456_v62, %v2796_v47  ;;  %v2838_v13 = vand.u32 4294901760, %v1452_v28  ;;  %v1599_v54 = vsub.f32 %v2841_v15, %v1598_v18 }
 0x297   :  { %v1442_v11 = vadd.f32 %v1441_v50, %v1377_v57  ;;  %v2826_v50 = vsub.f32 %v1490_v17, %v2801_v31  ;;  %v2861_v41 = vsub.f32 %v1452_v28, %v2838_v13 }
 0x299   :  { %v1457_v2 = vmax.f32 %v1442_v11, 0.0  ;;  %v1527_v58 = vand.u32 4294901760, %v2826_v50  ;;  %v1610_v61 = vand.u32 4294901760, %v2861_v41 }
 0x29a   :  { %v1281_v23 = vpop.f32.mrf.mxu3 }
 0x29b   :  { %v1282_v53 = vadd.f32 %v1281_v23, %v1202_v1  ;;  %v1206_v27 = vpop.f32.mrf.mxu2  ;;  %v2794_v32 = vand.u32 4294901760, %v1457_v2  ;;  %v2848_v23 = vand.u32 4294901760, %v1493_v29  ;;  %v1528_v35 = vsub.f32 %v2826_v50, %v1527_v58 }
 0x29c   :  { %v1207_v44 = vadd.f32 %v1206_v27, %v1118_v20  ;;  %v1496_v20 = vsel %vm1488_vm1, %v1462_v0, 0  ;;  %v1611_v60 = vsub.f32 %v2861_v41, %v1610_v61 }
 0x29d   :  { %v1381_v52 = vadd.f32 %v1380_v3, %v1282_v53  ;;  %v2806_v37 = vsub.f32 %v1457_v2, %v2794_v32  ;;  %v1586_v3 = vand.u32 4294901760, %v2817_v8  ;;  %v1592_v53 = vand.u32 4294901760, %v2832_v45  ;;  %v1463_v2 = vld [vmem:[%s2931_s5 + $0x18] sm:$0xff]  ;;  %s1933_s5 = smov [#allocation3]  }
 0x29e   :  { %v2871_v27 = vsub.f32 %v1493_v29, %v2848_v23  ;;  %v1612_v17 = vand.u32 4294901760, %v1611_v60  ;;  %s1886_s10 = sshll.u32 %s1933_s5, 4  ;;  %s1887_s10 = int_to_ptr.vmem [resolvable:$true] %s1886_s10 }
 0x29f   :  { %v1446_v5 = vadd.f32 %v1445_v34, %v1381_v52  ;;  %v1580_v48 = vand.u32 4294901760, %v2806_v37  ;;  %v2852_v34 = vsub.f32 %v1453_v7, %v2829_v49  ;;  %v1587_v52 = vsub.f32 %v2817_v8, %v1586_v3 }
 0x2a0   :  { %v1593_v11 = vsub.f32 %v2832_v45, %v1592_v53  ;;  %v1535_v12 = vand.u32 4294901760, %v2871_v27 }
 0x2a1   :  { %v1458_v19 = vmax.f32 %v1446_v5, 0.0  ;;  %v1581_v57 = vsub.f32 %v2806_v37, %v1580_v48  ;;  %v1604_v5 = vand.u32 4294901760, %v2852_v34 }
 0x2a2   :  { %v1287_v38 = vpop.f32.mrf.mxu3  ;;  %v1536_v9 = vsub.f32 %v2871_v27, %v1535_v12 }
 0x2a3   :  { %v1288_v46 = vadd.f32 %v1287_v38, %v1207_v44  ;;  %v2790_v55 = vand.u32 4294901760, %v1458_v19  ;;  %v1582_v33 = vand.u32 4294901760, %v1581_v57  ;;  %v1588_v44 = vand.u32 4294901760, %v1587_v52 }
 0x2a4   :  { %v1541_v38 = vand.u32 4294901760, %v1496_v20  ;;  %v1605_v39 = vsub.f32 %v2852_v34, %v1604_v5  ;;  %v1537_v63 = vand.u32 4294901760, %v1536_v9 }
 0x2a5   :  { %v1385_v59 = vadd.f32 %v1384_v26, %v1288_v46  ;;  %v2799_v21 = vsub.f32 %v1458_v19, %v2790_v55  ;;  %v1529_v19 = vand.u32 4294901760, %v1528_v35  ;;  %v1594_v26 = vand.u32 4294901760, %v1593_v11 }
 0x2a6   :  { %v1600_v46 = vand.u32 4294901760, %v1599_v54  ;;  %v1542_v62 = vsub.f32 %v1496_v20, %v1541_v38 }
 0x2a7   :  { %v1450_v56 = vadd.f32 %v1449_v36, %v1385_v59  ;;  %v1574_v40 = vand.u32 4294901760, %v2799_v21  ;;  %v1499_v36 = vsel %vm1488_vm1, %v1463_v2, 0  ;;  %v1606_v59 = vand.u32 4294901760, %v1605_v39 }
 0x2a8   :  { %v1543_v42 = vand.u32 4294901760, %v1542_v62 }
 0x2a9   :  { %v1459_v6 = vmax.f32 %v1450_v56, 0.0  ;;  %v1575_v1 = vsub.f32 %v2799_v21, %v1574_v40  ;;  %v1549_v56 = vand.u32 4294901760, %v1499_v36 }
 0x2aa   :  { %v1544_v43 = vsub.f32 %v1542_v62, %v1543_v42 }
 0x2ab   :  { %v2808_v4 = vand.u32 4294901760, %v1459_v6  ;;  %v1576_v25 = vand.u32 4294901760, %v1575_v1 }
 0x2ad   :  { %v2820_v10 = vsub.f32 %v1459_v6, %v2808_v4  ;;  %1510 = vmatpush.msra.mxu2 %v2808_v4  ;;  %1799 = vmatpush.msrb.mxu1 %v2808_v4  ;;  %v1545_v6 = vand.u32 4294901760, %v1544_v43 }
 0x2af   :  { %v1568_v24 = vand.u32 4294901760, %v2820_v10  ;;  %1512 = vmatpush.msra.mxu2 %v2790_v55  ;;  %1801 = vmatpush.msrb.mxu1 %v2790_v55 }
 0x2b1   :  { %v1569_v30 = vsub.f32 %v2820_v10, %v1568_v24  ;;  %1514 = vmatpush.msra.mxu2 %v2794_v32  ;;  %1744 = vmatpush.msrb.mxu0 %v1568_v24 }
 0x2b2   :  { %1803 = vmatpush.msrb.mxu1 %v2794_v32 }
 0x2b3   :  { %1516 = vmatpush.msra.mxu2 %v2796_v47  ;;  %1748 = vmatpush.msrb.mxu0 %v1574_v40  ;;  %v1570_v22 = vand.u32 4294901760, %v1569_v30 }
 0x2b4   :  { %1805 = vmatpush.msrb.mxu1 %v2796_v47 }
 0x2b5   :  { %1518 = vmatpush.msra.mxu2 %v2803_v16  ;;  %1571 = vmatpush.msra.mxu3 %v1570_v22 }
 0x2b6   :  { %1752 = vmatpush.msrb.mxu0 %v1580_v48  ;;  %1807 = vmatpush.msrb.mxu1 %v2803_v16  ;;  %v1471_v48 = vpop.permute.xlu0 %1470 }
 0x2b7   :  { %1520 = vmatpush.msra.mxu2 %v2814_v51  ;;  %1577 = vmatpush.msra.mxu3 %v1576_v25 }
 0x2b8   :  { %1756 = vmatpush.msrb.mxu0 %v1586_v3  ;;  %1809 = vmatpush.msrb.mxu1 %v2814_v51 }
 0x2b9   :  { %1522 = vmatpush.msra.mxu2 %v2829_v49  ;;  %1583 = vmatpush.msra.mxu3 %v1582_v33 }
 0x2ba   :  { %1760 = vmatpush.msrb.mxu0 %v1592_v53  ;;  %1811 = vmatpush.msrb.mxu1 %v2829_v49 }
 0x2bb   :  { %1524 = vmatpush.msra.mxu2 %v2838_v13  ;;  %1589 = vmatpush.msra.mxu3 %v1588_v44 }
 0x2bc   :  { %1764 = vmatpush.msrb.mxu0 %v1598_v18  ;;  %1813 = vmatpush.msrb.mxu1 %v2838_v13 }
 0x2bd   :  { %1530 = vmatmul.f32.vlgmr.msra.gmra.mxu2 %v1529_v19  ;;  %1595 = vmatpush.msra.mxu3 %v1594_v26 }
 0x2be   :  { %1641 = vmatpush.msrb.mxu2 %v2820_v10  ;;  %1768 = vmatpush.msrb.mxu0 %v1604_v5  ;;  %v1486_v11 = vpop.permute.xlu0 %1485 }
 0x2bf   :  { %1601 = vmatpush.msra.mxu3 %v1600_v46  ;;  %1815 = vmatmul.f32.vlgmr.msrb.gmra.mxu1 %v2801_v31 }
 0x2c0   :  { %1644 = vmatpush.msrb.mxu2 %v2799_v21  ;;  %1772 = vmatpush.msrb.mxu0 %v1610_v61  ;;  %v1550_v21 = vsub.f32 %v1499_v36, %v1549_v56 }
 0x2c1   :  { %1607 = vmatpush.msra.mxu3 %v1606_v59  ;;  %1774 = vmatmul.f32.vlgmr.msrb.gmra.mxu0 %v2801_v31 }
 0x2c2   :  { %1647 = vmatpush.msrb.mxu2 %v2806_v37  ;;  %v1551_v7 = vand.u32 4294901760, %v1550_v21 }
 0x2c3   :  { %1613 = vmatpush.msra.mxu3 %v1612_v17 }
 0x2c4   :  { %1650 = vmatpush.msrb.mxu2 %v2817_v8  ;;  %1615 = vmatmul.f32.vlgmr.msra.gmra.mxu3 %v2801_v31 }
 0x2c5   :  { %1538 = vmatmul.f32.gmra.mxu2 %v1537_v63  ;;  %1693 = vmatpush.msrb.mxu3 %v2808_v4 }
 0x2c6   :  { %1653 = vmatpush.msrb.mxu2 %v2832_v45 }
 0x2c7   :  { %1695 = vmatpush.msrb.mxu3 %v2790_v55  ;;  %1819 = vmatmul.f32.gmra.mxu1 %v2848_v23  ;;  %v1552_v55 = vsub.f32 %v1550_v21, %v1551_v7 }
 0x2c8   :  { %1656 = vmatpush.msrb.mxu2 %v2841_v15 }
 0x2c9   :  { %1697 = vmatpush.msrb.mxu3 %v2794_v32  ;;  %1778 = vmatmul.f32.gmra.mxu0 %v2848_v23  ;;  %v1553_v32 = vand.u32 4294901760, %v1552_v55 }
 0x2ca   :  { %1659 = vmatpush.msrb.mxu2 %v2852_v34 }
 0x2cb   :  { %1699 = vmatpush.msrb.mxu3 %v2796_v47 }
 0x2cc   :  { %1662 = vmatpush.msrb.mxu2 %v2861_v41  ;;  %1619 = vmatmul.f32.gmra.mxu3 %v2848_v23  ;;  %v1481_v23 = vpop.permute.xlu2 %1480 }
 0x2cd   :  { %1546 = vmatmul.f32.gmra.mxu2 %v1545_v6  ;;  %1701 = vmatpush.msrb.mxu3 %v2803_v16 }
 0x2cf   :  { %1703 = vmatpush.msrb.mxu3 %v2814_v51  ;;  %1823 = vmatmul.f32.gmra.mxu1 %v1541_v38 }
 0x2d1   :  { %1705 = vmatpush.msrb.mxu3 %v2829_v49  ;;  %1782 = vmatmul.f32.gmra.mxu0 %v1541_v38  ;;  %v1476_v49 = vpop.permute.xlu1 %1475 }
 0x2d3   :  { %1707 = vmatpush.msrb.mxu3 %v2838_v13 }
 0x2d4   :  { %1623 = vmatmul.f32.gmra.mxu3 %v1541_v38  ;;  %v1847_v59 = vpop.permute.xlu2 %1846 }
 0x2d5   :  { %1554 = vmatmul.f32.gmra.mxu2 %v1553_v32 }
 0x2d7   :  { %1827 = vmatmul.f32.gmra.mxu1 %v1549_v56 }
 0x2d9   :  { %1786 = vmatmul.f32.gmra.mxu0 %v1549_v56  ;;  %v1842_v26 = vpop.permute.xlu1 %1841 }
 0x2dc   :  { %1627 = vmatmul.f32.gmra.mxu3 %v1549_v56  ;;  %v1852_v56 = vpop.permute.xlu0 %1851 }
 0x2dd   :  { %1665 = vmatmul.f32.vlgmr.msrb.gmra.mxu2 %v2826_v50 }
 0x2e1   :  { %v1857_v32 = vpop.permute.xlu1 %1856 }
 0x2e4   :  { %1711 = vmatmul.f32.vlgmr.msrb.gmra.mxu3 %v1527_v58 }
 0x2e5   :  { %1670 = vmatmul.f32.gmra.mxu2 %v2871_v27 }
 0x2ec   :  { %1717 = vmatmul.f32.gmra.mxu3 %v1535_v12 }
 0x2ed   :  { %1675 = vmatmul.f32.gmra.mxu2 %v1542_v62 }
 0x2f4   :  { %1723 = vmatmul.f32.gmra.mxu3 %v1543_v42 }
 0x2f5   :  { %1680 = vmatmul.f32.gmra.mxu2 %v1550_v21 }
 0x2fc   :  { %1729 = vmatmul.f32.gmra.mxu3 %v1551_v7 }
 0x33c   :  { %v1816_v40 = vpop.f32.mrf.mxu1 }
 0x33e   :  { %v1775_v10 = vpop.f32.mrf.mxu0 }
 0x340   :  { %v1531_v47 = vpop.f32.mrf.mxu2 }
 0x341   :  { %v1532_v15 = vadd.f32 %v1531_v47, %v1471_v48 }
 0x344   :  { %v1820_v13 = vpop.f32.mrf.mxu1 }
 0x346   :  { %v1779_v45 = vpop.f32.mrf.mxu0 }
 0x347   :  { %v1616_v31 = vpop.f32.mrf.mxu3 }
 0x348   :  { %v1539_v16 = vpop.f32.mrf.mxu2  ;;  %v1617_v1 = vadd.f32 %v1616_v31, %v1532_v15 }
 0x349   :  { %v1540_v24 = vadd.f32 %v1539_v16, %v1476_v49 }
 0x34c   :  { %v1824_v27 = vpop.f32.mrf.mxu1 }
 0x34e   :  { %v1783_v18 = vpop.f32.mrf.mxu0 }
 0x34f   :  { %v1620_v37 = vpop.f32.mrf.mxu3 }
 0x350   :  { %v1547_v4 = vpop.f32.mrf.mxu2  ;;  %v1621_v3 = vadd.f32 %v1620_v37, %v1540_v24 }
 0x351   :  { %v1548_v22 = vadd.f32 %v1547_v4, %v1481_v23 }
 0x354   :  { %v1828_v17 = vpop.f32.mrf.mxu1 }
 0x356   :  { %v1787_v60 = vpop.f32.mrf.mxu0 }
 0x357   :  { %v1624_v14 = vpop.f32.mrf.mxu3 }
 0x358   :  { %v1555_v28 = vpop.f32.mrf.mxu2  ;;  %v1625_v0 = vadd.f32 %v1624_v14, %v1548_v22 }
 0x359   :  { %v1556_v5 = vadd.f32 %v1555_v28, %v1486_v11 }
 0x35f   :  { %v1628_v51 = vpop.f32.mrf.mxu3 }
 0x360   :  { %v1666_v8 = vpop.f32.mrf.mxu2  ;;  %v1629_v19 = vadd.f32 %v1628_v51, %v1556_v5  ;;  %v1876_v51 = vpop.permute.xlu2 %1875 }
 0x361   :  { %v1667_v57 = vadd.f32 %v1666_v8, %v1617_v1 }
 0x367   :  { %v1712_v50 = vpop.f32.mrf.mxu3 }
 0x368   :  { %v1671_v29 = vpop.f32.mrf.mxu2  ;;  %v1713_v41 = vadd.f32 %v1712_v50, %v1667_v57 }
 0x369   :  { %v1672_v58 = vadd.f32 %v1671_v29, %v1621_v3 }
 0x36a   :  { %v1776_v20 = vadd.f32 %v1775_v10, %v1713_v41  ;;  %v1878_v10 = vperm.slane %v1876_v51, 0 }
 0x36c   :  { %v1817_v12 = vadd.f32 %v1816_v40, %v1776_v20 }
 0x36e   :  { %v1831_v9 = vmax.f32 %v1817_v12, 0.0 }
 0x36f   :  { %v1718_v30 = vpop.f32.mrf.mxu3 }
 0x370   :  { %v1676_v34 = vpop.f32.mrf.mxu2  ;;  %v1719_v53 = vadd.f32 %v1718_v30, %v1672_v58  ;;  %v1859_v43 = vmul.f32 %v1842_v26, %v1831_v9 }
 0x371   :  { %v1677_v25 = vadd.f32 %v1676_v34, %v1625_v0 }
 0x372   :  { %v1780_v52 = vadd.f32 %v1779_v45, %v1719_v53 }
 0x374   :  { %v1821_v54 = vadd.f32 %v1820_v13, %v1780_v52 }
 0x376   :  { %v1832_v39 = vmax.f32 %v1821_v54, 0.0 }
 0x377   :  { %v1724_v35 = vpop.f32.mrf.mxu3 }
 0x378   :  { %v1725_v33 = vadd.f32 %v1724_v35, %v1677_v25  ;;  %v1681_v44 = vpop.f32.mrf.mxu2  ;;  %v1860_v63 = vmul.f32 %v1847_v59, %v1832_v39 }
 0x379   :  { %v1682_v2 = vadd.f32 %v1681_v44, %v1629_v19 }
 0x37a   :  { %v1784_v61 = vadd.f32 %v1783_v18, %v1725_v33  ;;  %v1863_v7 = vadd.f32 %v1860_v63, %v1859_v43 }
 0x37c   :  { %v1825_v38 = vadd.f32 %v1824_v27, %v1784_v61 }
 0x37e   :  { %v1833_v62 = vmax.f32 %v1825_v38, 0.0 }
 0x37f   :  { %v1730_v46 = vpop.f32.mrf.mxu3 }
 0x380   :  { %v1731_v36 = vadd.f32 %v1730_v46, %v1682_v2  ;;  %v1861_v21 = vmul.f32 %v1852_v56, %v1833_v62 }
 0x382   :  { %v1788_v42 = vadd.f32 %v1787_v60, %v1731_v36  ;;  %v1864_v47 = vadd.f32 %v1863_v7, %v1861_v21 }
 0x384   :  { %v1829_v6 = vadd.f32 %v1828_v17, %v1788_v42 }
 0x386   :  { %v1834_v55 = vmax.f32 %v1829_v6, 0.0 }
 0x388   :  { %v1862_v31 = vmul.f32 %v1857_v32, %v1834_v55 }
 0x38a   :  { %v1865_v16 = vadd.f32 %v1864_v47, %v1862_v31 }
 0x38c   :  { %v1866_v37 = vrot.slane %v1865_v16, 4 }
 0x38e   :  { %v1867_v4 = vadd.f32 %v1866_v37, %v1865_v16 }
 0x390   :  { %v1868_v14 = vrot.slane %v1867_v4, 2 }
 0x392   :  { %v1869_v28 = vadd.f32 %v1868_v14, %v1867_v4 }
 0x394   :  { %v1870_v8 = vrot.slane %v1869_v28, 1 }
 0x396   :  { %v1871_v40 = vadd.f32 %v1870_v8, %v1869_v28 }
 0x398   :  { %v1879_v50 = vadd.f32 %v1878_v10, %v1871_v40 }
 0x39a   :  { %1880 = vst [vmem:[#allocation3] sm:$0x1] %v1879_v50 }
 0x39b   :  { %1891 = dma.vmem_to_hbm [thread:$0]  %s1887_s10, 16, %s1889_s4, [#allocation4]  }
 0x39c   :  { %1930 = dma.done.wait [#allocation4], 16  }
 0x39d   :  { %1931 = vsyncadd [#allocation4], 4294967280 }
 0x39e   :  { %1896 = vsyncpa [#allocation4], 1 }

</bundles_post_ra>
